<compile_context>
chip_gen: v5e
topology: v5e:2x2
jax: 0.10.0
libtpu: 0.0.40
codegen_flags: <defaults>
</compile_context>

<pallas_src>
import functools

import jax
import jax.numpy as jnp
from jax.experimental import pallas as pl
from jax.experimental.pallas import tpu as pltpu

_NEG = -1e30  # finite "-inf" for masking (avoids inf-inf NaN in online softmax)


# ----------------------------------------------------------------------------
# Fused kernel: LSTM recurrence + attention (online softmax over T) + classify
# Grid: one axis over blocks of TT timesteps ("arbitrary" — recurrence carry).
# ----------------------------------------------------------------------------
def fused_lstm_attn_cls_kernel(ls_ref, emb_ref, wih_ref, b_ref, whh_ref,
                               wq_ref, bq_ref, wc_ref, bc_ref, out_ref,
                               h_ref, c_ref, m_ref, l_ref, ctx_ref):
    B, H = h_ref.shape                      # padded batch / padded hidden
    TT = emb_ref.shape[0] // B              # timesteps in this block

    @pl.when(pl.program_id(0) == 0)
    def _init():
        h_ref[...] = jnp.zeros_like(h_ref)
        c_ref[...] = jnp.zeros_like(c_ref)
        m_ref[...] = jnp.full_like(m_ref, _NEG)
        l_ref[...] = jnp.zeros_like(l_ref)
        ctx_ref[...] = jnp.zeros_like(ctx_ref)

    # Hoisted input projection: one (TT*B, E) x (E, 4H) MXU matmul per block.
    gx_all = (jnp.dot(emb_ref[...], wih_ref[...],
                      preferred_element_type=jnp.float32)
              + b_ref[...])                                   # (TT*B, 4H)

    # Carry state as values across the unrolled inner time loop.
    h = h_ref[...]
    c = c_ref[...]
    m = m_ref[...]
    l = l_ref[...]
    ctx = ctx_ref[...]

    ls = ls_ref[...]                                          # (B, 1) int32
    w_hh = whh_ref[...]                                       # (H, 4H)
    wq = wq_ref[...]                                          # (1, H)
    bq = bq_ref[...]                                          # (1, 1)
    t_base = pl.program_id(0) * TT

    for t in range(TT):                                       # static, unrolled
        gx_t = gx_all[t * B:(t + 1) * B, :]                   # sublane-aligned
        gates = gx_t + jnp.dot(h, w_hh,
                               preferred_element_type=jnp.float32)

        i = jax.nn.sigmoid(gates[:, 0 * H:1 * H])             # lane-aligned
        f = jax.nn.sigmoid(gates[:, 1 * H:2 * H])
        g = jnp.tanh(gates[:, 2 * H:3 * H])
        o = jax.nn.sigmoid(gates[:, 3 * H:4 * H])

        c = f * c + i * g
        h = o * jnp.tanh(c)

        # attention query as a lane reduction (no N=1 MXU matmul, no reshape)
        logit = jnp.sum(h * wq, axis=-1, keepdims=True) + bq  # (B, 1)

        # online softmax update (length mask over time)
        mask = (t_base + t) < ls                               # (B, 1) bool
        logit_m = jnp.where(mask, logit, _NEG)
        m_new = jnp.maximum(m, logit_m)
        a = jnp.exp(m - m_new)
        p = jnp.exp(jnp.where(mask, logit - m_new, _NEG))      # 0 where masked
        l = a * l + p
        ctx = a * ctx + p * h
        m = m_new

    # persist carries for the next time-block
    h_ref[...] = h
    c_ref[...] = c
    m_ref[...] = m
    l_ref[...] = l
    ctx_ref[...] = ctx

    @pl.when(pl.program_id(0) == pl.num_programs(0) - 1)
    def _finalize():
        context = ctx / l                                      # (B, H)
        out_ref[...] = (jnp.dot(context, wc_ref[...],
                                preferred_element_type=jnp.float32)
                        + bc_ref[...])


# ----------------------------------------------------------------------------
# Padding helpers (zero-padded lanes/rows stay exactly zero through the LSTM:
# padded gate cols -> 0 pre-activation -> i,f,o=0.5, g=0 -> c,h stay 0).
# ----------------------------------------------------------------------------
def _pad_gates(w, h, h_pad):
    """Zero-pad each of the 4 [i,f,g,o] gate blocks along the last axis."""
    if h_pad == h:
        return w
    lead = w.shape[:-1]
    w = w.reshape(lead + (4, h))
    pads = [(0, 0)] * (w.ndim - 1) + [(0, h_pad - h)]
    return jnp.pad(w, pads).reshape(lead + (4 * h_pad,))


def run_fused(emb, ls, w_ih, b_lstm, w_hh, w_q, b_q, w_c, b_c, tt):
    T, B, E = emb.shape
    H = w_hh.shape[0]
    C = w_c.shape[1]

    # --- sublane/lane alignment padding (results unchanged; see note above) ---
    Bp = max(8, ((B + 7) // 8) * 8)            # sublane-aligned batch
    Hp = ((H + 127) // 128) * 128              # lane-aligned hidden dim

    if Bp != B:
        emb = jnp.pad(emb, ((0, 0), (0, Bp - B), (0, 0)))
        ls = jnp.pad(ls, (0, Bp - B), constant_values=1)   # avoid 0/0 in pads

    w_ih_p = _pad_gates(w_ih, H, Hp)                       # (E, 4Hp)
    b_p = _pad_gates(b_lstm, H, Hp)                        # (1, 4Hp)
    w_hh_p = _pad_gates(w_hh, H, Hp)                       # (H, 4Hp)
    if Hp != H:
        w_hh_p = jnp.pad(w_hh_p, ((0, Hp - H), (0, 0)))    # (Hp, 4Hp)
        w_q_p = jnp.pad(w_q, ((0, 0), (0, Hp - H)))        # (1, Hp)
        w_c_p = jnp.pad(w_c, ((0, Hp - H), (0, 0)))        # (Hp, C)
    else:
        w_q_p, w_c_p = w_q, w_c

    # Timestep block: pad T to a multiple of tt.  Padded steps have
    # t >= T >= ls[b], so they are fully masked in the attention.
    tt = max(1, tt)
    T_pad = ((T + tt - 1) // tt) * tt
    if T_pad != T:
        emb = jnp.pad(emb, ((0, T_pad - T), (0, 0), (0, 0)))
    emb_flat = emb.reshape(T_pad * Bp, E)      # contiguous, row = t*Bp + b
    nt = T_pad // tt

    ls_col = ls.astype(jnp.int32).reshape(Bp, 1)

    out = pl.pallas_call(
        fused_lstm_attn_cls_kernel,
        out_shape=jax.ShapeDtypeStruct((Bp, C), jnp.float32),
        grid_spec=pltpu.PrefetchScalarGridSpec(
            num_scalar_prefetch=0,
            grid=(nt,),
            in_specs=[
                pl.BlockSpec((Bp, 1), lambda t: (0, 0)),            # lengths
                pl.BlockSpec((tt * Bp, E), lambda t: (t, 0)),       # emb slab
                pl.BlockSpec((E, 4 * Hp), lambda t: (0, 0)),        # w_ih
                pl.BlockSpec((1, 4 * Hp), lambda t: (0, 0)),        # fused bias
                pl.BlockSpec((Hp, 4 * Hp), lambda t: (0, 0)),       # w_hh
                pl.BlockSpec((1, Hp), lambda t: (0, 0)),            # w_q row
                pl.BlockSpec((1, 1), lambda t: (0, 0)),             # b_q
                pl.BlockSpec((Hp, C), lambda t: (0, 0)),            # w_c
                pl.BlockSpec((1, C), lambda t: (0, 0)),             # b_c
            ],
            out_specs=pl.BlockSpec((Bp, C), lambda t: (0, 0)),
            scratch_shapes=[
                pltpu.VMEM((Bp, Hp), jnp.float32),   # h carry
                pltpu.VMEM((Bp, Hp), jnp.float32),   # c carry
                pltpu.VMEM((Bp, 1), jnp.float32),    # running softmax max
                pltpu.VMEM((Bp, 1), jnp.float32),    # running softmax denom
                pltpu.VMEM((Bp, Hp), jnp.float32),   # context accumulator
            ],
        ),
        compiler_params=pltpu.CompilerParams(
            dimension_semantics=("arbitrary",)),     # time axis has a carry
    )(ls_col, emb_flat, w_ih_p, b_p, w_hh_p, w_q_p, b_q, w_c_p, b_c)

    return out[:B]                                    # drop padded batch rows


# ----------------------------------------------------------------------------
# Full forward (embedding gather is JAX glue, everything else is one kernel)
# ----------------------------------------------------------------------------
@functools.partial(jax.jit, static_argnames=("tt",))
def lstm_classifier_forward(params, inputs, ls, tt=8):
    emb = jnp.take(params["embedding"], inputs, axis=0)     # (T, B, E)
    return run_fused(emb, ls,
                     params["w_ih"], params["b_lstm"], params["w_hh"],
                     params["w_q"], params["b_q"],
                     params["w_c"], params["b_c"], tt)


# ----------------------------------------------------------------------------
# Pure-JAX reference (for correctness check)
# ----------------------------------------------------------------------------
def reference_forward(params, inputs, ls):
    emb = jnp.take(params["embedding"], inputs, axis=0)      # (T, B, E)
    T, B, E = emb.shape
    H = params["w_hh"].shape[0]

    def step(carry, x_t):
        h, c = carry
        gates = x_t @ params["w_ih"] + h @ params["w_hh"] + params["b_lstm"][0]
        i = jax.nn.sigmoid(gates[:, 0 * H:1 * H])
        f = jax.nn.sigmoid(gates[:, 1 * H:2 * H])
        g = jnp.tanh(gates[:, 2 * H:3 * H])
        o = jax.nn.sigmoid(gates[:, 3 * H:4 * H])
        c = f * c + i * g
        h = o * jnp.tanh(c)
        return (h, c), h

    h0 = jnp.zeros((B, H), jnp.float32)
    c0 = jnp.zeros((B, H), jnp.float32)
    _, hs = jax.lax.scan(step, (h0, c0), emb)                # (T, B, H)

    alpha_logits = jnp.einsum("tbh,h->tb", hs, params["w_q"][0]) + params["b_q"][0, 0]
    mask = jnp.arange(T)[:, None] < ls[None, :]
    alpha_logits = jnp.where(mask, alpha_logits, -jnp.inf)
    alpha = jax.nn.softmax(alpha_logits, axis=0)
    context = jnp.sum(hs * alpha[:, :, None], axis=0)        # (B, H)
    return context @ params["w_c"] + params["b_c"]


# ----------------------------------------------------------------------------
# Deterministic parameter init + demo
# ----------------------------------------------------------------------------
def init_params(key, vocab_size, emb_dim, hidden_dim, num_class):
    ks = jax.random.split(key, 8)
    s = 1.0 / jnp.sqrt(hidden_dim)
    u = lambda k, shape: jax.random.uniform(k, shape, jnp.float32, -s, s)
    return {
        "embedding": jax.random.normal(ks[0], (vocab_size, emb_dim), jnp.float32),
        "w_ih": u(ks[1], (emb_dim, 4 * hidden_dim)),
        "w_hh": u(ks[2], (hidden_dim, 4 * hidden_dim)),
        "b_lstm": u(ks[3], (1, 4 * hidden_dim)),   # b_ih + b_hh fused
        "w_q": u(ks[4], (1, hidden_dim)),          # query weight as a row
        "b_q": u(ks[5], (1, 1)),
        "w_c": u(ks[6], (hidden_dim, num_class)),
        "b_c": u(ks[7], (1, num_class)),
    }


if __name__ == "__main__":
    VOCAB, EMB, HID, NCLS = 50, 16, 32, 4
    T, B = 8, 2

    key = jax.random.PRNGKey(0)
    k_par, k_tok, k_len = jax.random.split(key, 3)

    params = init_params(k_par, VOCAB, EMB, HID, NCLS)
    inputs = jax.random.randint(k_tok, (T, B), 0, VOCAB, dtype=jnp.int32)  # (T, B)
    ls = jax.random.randint(k_len, (B,), 1, T + 1, dtype=jnp.int32)        # lengths >= 1

    # tt=4 -> 2 grid steps, exercising the cross-block h/c/softmax carry path.
    logits = lstm_classifier_forward(params, inputs, ls, tt=4)
    logits = jax.block_until_ready(logits)

    ref = reference_forward(params, inputs, ls)
    assert logits.shape == (B, NCLS)
    assert jnp.allclose(logits, ref, rtol=1e-4, atol=1e-4), (logits, ref)

    print("KERNEL_OK")
</pallas_src>

<mosaic_0001>
module attributes {stable_mosaic.version = 11 : i64} {
  func.func @fused_lstm_attn_cls_kernel(%arg0: i32, %arg1: memref<8x1xi32, #tpu.memory_space<vmem>>, %arg2: memref<32x16xf32, #tpu.memory_space<vmem>>, %arg3: memref<16x512xf32, #tpu.memory_space<vmem>>, %arg4: memref<1x512xf32, #tpu.memory_space<vmem>>, %arg5: memref<128x512xf32, #tpu.memory_space<vmem>>, %arg6: memref<1x128xf32, #tpu.memory_space<vmem>>, %arg7: memref<1x1xf32, #tpu.memory_space<vmem>>, %arg8: memref<128x4xf32, #tpu.memory_space<vmem>>, %arg9: memref<1x4xf32, #tpu.memory_space<vmem>>, %arg10: memref<8x4xf32, #tpu.memory_space<vmem>>, %arg11: memref<8x128xf32, #tpu.memory_space<vmem>>, %arg12: memref<8x128xf32, #tpu.memory_space<vmem>>, %arg13: memref<8x1xf32, #tpu.memory_space<vmem>>, %arg14: memref<8x1xf32, #tpu.memory_space<vmem>>, %arg15: memref<8x128xf32, #tpu.memory_space<vmem>>) attributes {dimension_semantics = [#tpu.dimension_semantics<arbitrary>], iteration_bounds = array<i64: 2>, scalar_prefetch = 0 : i64, scratch_operands = 5 : i64, tpu.core_type = #tpu.core_type<tc>, window_params = [{pipeline_mode = #tpu.pipeline_mode<synchronous>, transform_indices = @transform_0, window_bounds = array<i64: 8, 1>}, {transform_indices = @transform_1, window_bounds = array<i64: 32, 16>}, {pipeline_mode = #tpu.pipeline_mode<synchronous>, transform_indices = @transform_2, window_bounds = array<i64: 16, 512>}, {pipeline_mode = #tpu.pipeline_mode<synchronous>, transform_indices = @transform_3, window_bounds = array<i64: 1, 512>}, {pipeline_mode = #tpu.pipeline_mode<synchronous>, transform_indices = @transform_4, window_bounds = array<i64: 128, 512>}, {pipeline_mode = #tpu.pipeline_mode<synchronous>, transform_indices = @transform_5, window_bounds = array<i64: 1, 128>}, {pipeline_mode = #tpu.pipeline_mode<synchronous>, transform_indices = @transform_6, window_bounds = array<i64: 1, 1>}, {pipeline_mode = #tpu.pipeline_mode<synchronous>, transform_indices = @transform_7, window_bounds = array<i64: 128, 4>}, {pipeline_mode = #tpu.pipeline_mode<synchronous>, transform_indices = @transform_8, window_bounds = array<i64: 1, 4>}, {pipeline_mode = #tpu.pipeline_mode<synchronous>, transform_indices = @transform_9, window_bounds = array<i64: 8, 4>}]} {
    %c0_i32 = arith.constant 0 : i32
    %0 = arith.cmpi eq, %arg0, %c0_i32 : i32
    %1 = arith.extui %0 : i1 to i32
    %c0_i32_0 = arith.constant 0 : i32
    %2 = arith.cmpi ne, %1, %c0_i32_0 : i32
    scf.if %2 {
      %cst_65 = arith.constant 0.000000e+00 : f32
      %239 = vector.broadcast %cst_65 : f32 to vector<8x128xf32>
      %c0_66 = arith.constant 0 : index
      %c0_67 = arith.constant 0 : index
      %240 = vector.load %arg11[%c0_66, %c0_67] : memref<8x128xf32, #tpu.memory_space<vmem>>, vector<8x128xf32>
      tpu.vector_store %arg11[%c0_66, %c0_67], %239 {strides = array<i32>} : memref<8x128xf32, #tpu.memory_space<vmem>>, vector<8x128xf32>,
      %cst_68 = arith.constant 0.000000e+00 : f32
      %241 = vector.broadcast %cst_68 : f32 to vector<8x128xf32>
      %c0_69 = arith.constant 0 : index
      %c0_70 = arith.constant 0 : index
      %242 = vector.load %arg12[%c0_69, %c0_70] : memref<8x128xf32, #tpu.memory_space<vmem>>, vector<8x128xf32>
      tpu.vector_store %arg12[%c0_69, %c0_70], %241 {strides = array<i32>} : memref<8x128xf32, #tpu.memory_space<vmem>>, vector<8x128xf32>,
      %cst_71 = arith.constant -1.000000e+30 : f32
      %243 = vector.broadcast %cst_71 : f32 to vector<8x1xf32>
      %c0_72 = arith.constant 0 : index
      %c0_73 = arith.constant 0 : index
      %244 = vector.load %arg13[%c0_72, %c0_73] : memref<8x1xf32, #tpu.memory_space<vmem>>, vector<8x1xf32>
      tpu.vector_store %arg13[%c0_72, %c0_73], %243 {strides = array<i32>} : memref<8x1xf32, #tpu.memory_space<vmem>>, vector<8x1xf32>,
      %cst_74 = arith.constant 0.000000e+00 : f32
      %245 = vector.broadcast %cst_74 : f32 to vector<8x1xf32>
      %c0_75 = arith.constant 0 : index
      %c0_76 = arith.constant 0 : index
      %246 = vector.load %arg14[%c0_75, %c0_76] : memref<8x1xf32, #tpu.memory_space<vmem>>, vector<8x1xf32>
      tpu.vector_store %arg14[%c0_75, %c0_76], %245 {strides = array<i32>} : memref<8x1xf32, #tpu.memory_space<vmem>>, vector<8x1xf32>,
      %cst_77 = arith.constant 0.000000e+00 : f32
      %247 = vector.broadcast %cst_77 : f32 to vector<8x128xf32>
      %c0_78 = arith.constant 0 : index
      %c0_79 = arith.constant 0 : index
      %248 = vector.load %arg15[%c0_78, %c0_79] : memref<8x128xf32, #tpu.memory_space<vmem>>, vector<8x128xf32>
      tpu.vector_store %arg15[%c0_78, %c0_79], %247 {strides = array<i32>} : memref<8x128xf32, #tpu.memory_space<vmem>>, vector<8x128xf32>,
    } else {
    }
    %c0 = arith.constant 0 : index
    %c0_1 = arith.constant 0 : index
    %3 = vector.load %arg2[%c0, %c0_1] : memref<32x16xf32, #tpu.memory_space<vmem>>, vector<32x16xf32>
    %c0_2 = arith.constant 0 : index
    %c0_3 = arith.constant 0 : index
    %4 = vector.load %arg3[%c0_2, %c0_3] : memref<16x512xf32, #tpu.memory_space<vmem>>, vector<16x512xf32>
    %cst = arith.constant dense<0.000000e+00> : vector<32x512xf32>
    %5 = tpu.matmul %3, %4, %cst {dimension_numbers = #tpu.dot_dimension_numbers<[1], [0], [0], [1], [0, 0, 1, 1], [], []>} : vector<32x16xf32>, vector<16x512xf32>, vector<32x512xf32> -> vector<32x512xf32>
    %c0_4 = arith.constant 0 : index
    %c0_5 = arith.constant 0 : index
    %6 = vector.load %arg4[%c0_4, %c0_5] : memref<1x512xf32, #tpu.memory_space<vmem>>, vector<1x512xf32>
    %7 = vector.broadcast %6 : vector<1x512xf32> to vector<32x512xf32>
    %8 = arith.addf %5, %7 : vector<32x512xf32>
    %c0_6 = arith.constant 0 : index
    %c0_7 = arith.constant 0 : index
    %9 = vector.load %arg11[%c0_6, %c0_7] : memref<8x128xf32, #tpu.memory_space<vmem>>, vector<8x128xf32>
    %c0_8 = arith.constant 0 : index
    %c0_9 = arith.constant 0 : index
    %10 = vector.load %arg12[%c0_8, %c0_9] : memref<8x128xf32, #tpu.memory_space<vmem>>, vector<8x128xf32>
    %c0_10 = arith.constant 0 : index
    %c0_11 = arith.constant 0 : index
    %11 = vector.load %arg13[%c0_10, %c0_11] : memref<8x1xf32, #tpu.memory_space<vmem>>, vector<8x1xf32>
    %c0_12 = arith.constant 0 : index
    %c0_13 = arith.constant 0 : index
    %12 = vector.load %arg14[%c0_12, %c0_13] : memref<8x1xf32, #tpu.memory_space<vmem>>, vector<8x1xf32>
    %c0_14 = arith.constant 0 : index
    %c0_15 = arith.constant 0 : index
    %13 = vector.load %arg15[%c0_14, %c0_15] : memref<8x128xf32, #tpu.memory_space<vmem>>, vector<8x128xf32>
    %c0_16 = arith.constant 0 : index
    %c0_17 = arith.constant 0 : index
    %14 = vector.load %arg1[%c0_16, %c0_17] : memref<8x1xi32, #tpu.memory_space<vmem>>, vector<8x1xi32>
    %c0_18 = arith.constant 0 : index
    %c0_19 = arith.constant 0 : index
    %15 = vector.load %arg5[%c0_18, %c0_19] : memref<128x512xf32, #tpu.memory_space<vmem>>, vector<128x512xf32>
    %c0_20 = arith.constant 0 : index
    %c0_21 = arith.constant 0 : index
    %16 = vector.load %arg6[%c0_20, %c0_21] : memref<1x128xf32, #tpu.memory_space<vmem>>, vector<1x128xf32>
    %c0_22 = arith.constant 0 : index
    %c0_23 = arith.constant 0 : index
    %17 = vector.load %arg7[%c0_22, %c0_23] : memref<1x1xf32, #tpu.memory_space<vmem>>, vector<1x1xf32>
    %c4_i32 = arith.constant 4 : i32
    %18 = arith.muli %arg0, %c4_i32 : i32
    %19 = vector.extract_strided_slice %8 {offsets = [0, 0], sizes = [8, 512], strides = [1, 1]} : vector<32x512xf32> to vector<8x512xf32>
    %cst_24 = arith.constant dense<0.000000e+00> : vector<8x512xf32>
    %20 = tpu.matmul %9, %15, %cst_24 {dimension_numbers = #tpu.dot_dimension_numbers<[1], [0], [0], [1], [0, 0, 1, 1], [], []>} : vector<8x128xf32>, vector<128x512xf32>, vector<8x512xf32> -> vector<8x512xf32>
    %21 = arith.addf %19, %20 : vector<8x512xf32>
    %22 = vector.extract_strided_slice %21 {offsets = [0, 0], sizes = [8, 128], strides = [1, 1]} : vector<8x512xf32> to vector<8x128xf32>
    %23 = arith.negf %22 : vector<8x128xf32>
    %24 = math.exp %23 : vector<8x128xf32>
    %cst_25 = arith.constant 1.000000e+00 : f32
    %25 = vector.broadcast %cst_25 : f32 to vector<8x128xf32>
    %26 = arith.addf %25, %24 : vector<8x128xf32>
    %27 = arith.divf %25, %26 : vector<8x128xf32>
    %28 = vector.extract_strided_slice %21 {offsets = [0, 128], sizes = [8, 128], strides = [1, 1]} : vector<8x512xf32> to vector<8x128xf32>
    %29 = arith.negf %28 : vector<8x128xf32>
    %30 = math.exp %29 : vector<8x128xf32>
    %cst_26 = arith.constant 1.000000e+00 : f32
    %31 = vector.broadcast %cst_26 : f32 to vector<8x128xf32>
    %32 = arith.addf %31, %30 : vector<8x128xf32>
    %33 = arith.divf %31, %32 : vector<8x128xf32>
    %34 = vector.extract_strided_slice %21 {offsets = [0, 256], sizes = [8, 128], strides = [1, 1]} : vector<8x512xf32> to vector<8x128xf32>
    %35 = math.tanh %34 : vector<8x128xf32>
    %36 = vector.extract_strided_slice %21 {offsets = [0, 384], sizes = [8, 128], strides = [1, 1]} : vector<8x512xf32> to vector<8x128xf32>
    %37 = arith.negf %36 : vector<8x128xf32>
    %38 = math.exp %37 : vector<8x128xf32>
    %cst_27 = arith.constant 1.000000e+00 : f32
    %39 = vector.broadcast %cst_27 : f32 to vector<8x128xf32>
    %40 = arith.addf %39, %38 : vector<8x128xf32>
    %41 = arith.divf %39, %40 : vector<8x128xf32>
    %42 = arith.mulf %33, %10 : vector<8x128xf32>
    %43 = arith.mulf %27, %35 : vector<8x128xf32>
    %44 = arith.addf %42, %43 : vector<8x128xf32>
    %45 = math.tanh %44 : vector<8x128xf32>
    %46 = arith.mulf %41, %45 : vector<8x128xf32>
    %47 = vector.broadcast %16 : vector<1x128xf32> to vector<8x128xf32>
    %48 = arith.mulf %46, %47 : vector<8x128xf32>
    %cst_28 = arith.constant dense<0.000000e+00> : vector<8xf32>
    %49 = vector.multi_reduction <add>, %48, %cst_28 [1] : vector<8x128xf32> to vector<8xf32>
    %50 = vector.shape_cast %49 : vector<8xf32> to vector<8x1xf32>
    %51 = vector.broadcast %17 : vector<1x1xf32> to vector<8x1xf32>
    %52 = arith.addf %50, %51 : vector<8x1xf32>
    %c0_i32_29 = arith.constant 0 : i32
    %53 = arith.addi %18, %c0_i32_29 : i32
    %54 = vector.broadcast %53 : i32 to vector<8x1xi32>
    %55 = arith.cmpi slt, %54, %14 : vector<8x1xi32>
    %cst_30 = arith.constant -1.000000e+30 : f32
    %56 = vector.broadcast %cst_30 : f32 to vector<8x1xf32>
    %57 = arith.select %55, %52, %56 : vector<8x1xi1>, vector<8x1xf32>
    %58 = arith.maximumf %11, %57 : vector<8x1xf32>
    %59 = arith.subf %11, %58 : vector<8x1xf32>
    %60 = math.exp %59 : vector<8x1xf32>
    %61 = arith.subf %52, %58 : vector<8x1xf32>
    %cst_31 = arith.constant -1.000000e+30 : f32
    %62 = vector.broadcast %cst_31 : f32 to vector<8x1xf32>
    %63 = arith.select %55, %61, %62 : vector<8x1xi1>, vector<8x1xf32>
    %64 = math.exp %63 : vector<8x1xf32>
    %65 = arith.mulf %60, %12 : vector<8x1xf32>
    %66 = arith.addf %65, %64 : vector<8x1xf32>
    %67 = vector.broadcast %60 : vector<8x1xf32> to vector<8x128xf32>
    %68 = arith.mulf %67, %13 : vector<8x128xf32>
    %69 = vector.broadcast %64 : vector<8x1xf32> to vector<8x128xf32>
    %70 = arith.mulf %69, %46 : vector<8x128xf32>
    %71 = arith.addf %68, %70 : vector<8x128xf32>
    %72 = vector.extract_strided_slice %8 {offsets = [8, 0], sizes = [8, 512], strides = [1, 1]} : vector<32x512xf32> to vector<8x512xf32>
    %cst_32 = arith.constant dense<0.000000e+00> : vector<8x512xf32>
    %73 = tpu.matmul %46, %15, %cst_32 {dimension_numbers = #tpu.dot_dimension_numbers<[1], [0], [0], [1], [0, 0, 1, 1], [], []>} : vector<8x128xf32>, vector<128x512xf32>, vector<8x512xf32> -> vector<8x512xf32>
    %74 = arith.addf %72, %73 : vector<8x512xf32>
    %75 = vector.extract_strided_slice %74 {offsets = [0, 0], sizes = [8, 128], strides = [1, 1]} : vector<8x512xf32> to vector<8x128xf32>
    %76 = arith.negf %75 : vector<8x128xf32>
    %77 = math.exp %76 : vector<8x128xf32>
    %cst_33 = arith.constant 1.000000e+00 : f32
    %78 = vector.broadcast %cst_33 : f32 to vector<8x128xf32>
    %79 = arith.addf %78, %77 : vector<8x128xf32>
    %80 = arith.divf %78, %79 : vector<8x128xf32>
    %81 = vector.extract_strided_slice %74 {offsets = [0, 128], sizes = [8, 128], strides = [1, 1]} : vector<8x512xf32> to vector<8x128xf32>
    %82 = arith.negf %81 : vector<8x128xf32>
    %83 = math.exp %82 : vector<8x128xf32>
    %cst_34 = arith.constant 1.000000e+00 : f32
    %84 = vector.broadcast %cst_34 : f32 to vector<8x128xf32>
    %85 = arith.addf %84, %83 : vector<8x128xf32>
    %86 = arith.divf %84, %85 : vector<8x128xf32>
    %87 = vector.extract_strided_slice %74 {offsets = [0, 256], sizes = [8, 128], strides = [1, 1]} : vector<8x512xf32> to vector<8x128xf32>
    %88 = math.tanh %87 : vector<8x128xf32>
    %89 = vector.extract_strided_slice %74 {offsets = [0, 384], sizes = [8, 128], strides = [1, 1]} : vector<8x512xf32> to vector<8x128xf32>
    %90 = arith.negf %89 : vector<8x128xf32>
    %91 = math.exp %90 : vector<8x128xf32>
    %cst_35 = arith.constant 1.000000e+00 : f32
    %92 = vector.broadcast %cst_35 : f32 to vector<8x128xf32>
    %93 = arith.addf %92, %91 : vector<8x128xf32>
    %94 = arith.divf %92, %93 : vector<8x128xf32>
    %95 = arith.mulf %86, %44 : vector<8x128xf32>
    %96 = arith.mulf %80, %88 : vector<8x128xf32>
    %97 = arith.addf %95, %96 : vector<8x128xf32>
    %98 = math.tanh %97 : vector<8x128xf32>
    %99 = arith.mulf %94, %98 : vector<8x128xf32>
    %100 = vector.broadcast %16 : vector<1x128xf32> to vector<8x128xf32>
    %101 = arith.mulf %99, %100 : vector<8x128xf32>
    %cst_36 = arith.constant dense<0.000000e+00> : vector<8xf32>
    %102 = vector.multi_reduction <add>, %101, %cst_36 [1] : vector<8x128xf32> to vector<8xf32>
    %103 = vector.shape_cast %102 : vector<8xf32> to vector<8x1xf32>
    %104 = vector.broadcast %17 : vector<1x1xf32> to vector<8x1xf32>
    %105 = arith.addf %103, %104 : vector<8x1xf32>
    %c1_i32 = arith.constant 1 : i32
    %106 = arith.addi %18, %c1_i32 : i32
    %107 = vector.broadcast %106 : i32 to vector<8x1xi32>
    %108 = arith.cmpi slt, %107, %14 : vector<8x1xi32>
    %cst_37 = arith.constant -1.000000e+30 : f32
    %109 = vector.broadcast %cst_37 : f32 to vector<8x1xf32>
    %110 = arith.select %108, %105, %109 : vector<8x1xi1>, vector<8x1xf32>
    %111 = arith.maximumf %58, %110 : vector<8x1xf32>
    %112 = arith.subf %58, %111 : vector<8x1xf32>
    %113 = math.exp %112 : vector<8x1xf32>
    %114 = arith.subf %105, %111 : vector<8x1xf32>
    %cst_38 = arith.constant -1.000000e+30 : f32
    %115 = vector.broadcast %cst_38 : f32 to vector<8x1xf32>
    %116 = arith.select %108, %114, %115 : vector<8x1xi1>, vector<8x1xf32>
    %117 = math.exp %116 : vector<8x1xf32>
    %118 = arith.mulf %113, %66 : vector<8x1xf32>
    %119 = arith.addf %118, %117 : vector<8x1xf32>
    %120 = vector.broadcast %113 : vector<8x1xf32> to vector<8x128xf32>
    %121 = arith.mulf %120, %71 : vector<8x128xf32>
    %122 = vector.broadcast %117 : vector<8x1xf32> to vector<8x128xf32>
    %123 = arith.mulf %122, %99 : vector<8x128xf32>
    %124 = arith.addf %121, %123 : vector<8x128xf32>
    %125 = vector.extract_strided_slice %8 {offsets = [16, 0], sizes = [8, 512], strides = [1, 1]} : vector<32x512xf32> to vector<8x512xf32>
    %cst_39 = arith.constant dense<0.000000e+00> : vector<8x512xf32>
    %126 = tpu.matmul %99, %15, %cst_39 {dimension_numbers = #tpu.dot_dimension_numbers<[1], [0], [0], [1], [0, 0, 1, 1], [], []>} : vector<8x128xf32>, vector<128x512xf32>, vector<8x512xf32> -> vector<8x512xf32>
    %127 = arith.addf %125, %126 : vector<8x512xf32>
    %128 = vector.extract_strided_slice %127 {offsets = [0, 0], sizes = [8, 128], strides = [1, 1]} : vector<8x512xf32> to vector<8x128xf32>
    %129 = arith.negf %128 : vector<8x128xf32>
    %130 = math.exp %129 : vector<8x128xf32>
    %cst_40 = arith.constant 1.000000e+00 : f32
    %131 = vector.broadcast %cst_40 : f32 to vector<8x128xf32>
    %132 = arith.addf %131, %130 : vector<8x128xf32>
    %133 = arith.divf %131, %132 : vector<8x128xf32>
    %134 = vector.extract_strided_slice %127 {offsets = [0, 128], sizes = [8, 128], strides = [1, 1]} : vector<8x512xf32> to vector<8x128xf32>
    %135 = arith.negf %134 : vector<8x128xf32>
    %136 = math.exp %135 : vector<8x128xf32>
    %cst_41 = arith.constant 1.000000e+00 : f32
    %137 = vector.broadcast %cst_41 : f32 to vector<8x128xf32>
    %138 = arith.addf %137, %136 : vector<8x128xf32>
    %139 = arith.divf %137, %138 : vector<8x128xf32>
    %140 = vector.extract_strided_slice %127 {offsets = [0, 256], sizes = [8, 128], strides = [1, 1]} : vector<8x512xf32> to vector<8x128xf32>
    %141 = math.tanh %140 : vector<8x128xf32>
    %142 = vector.extract_strided_slice %127 {offsets = [0, 384], sizes = [8, 128], strides = [1, 1]} : vector<8x512xf32> to vector<8x128xf32>
    %143 = arith.negf %142 : vector<8x128xf32>
    %144 = math.exp %143 : vector<8x128xf32>
    %cst_42 = arith.constant 1.000000e+00 : f32
    %145 = vector.broadcast %cst_42 : f32 to vector<8x128xf32>
    %146 = arith.addf %145, %144 : vector<8x128xf32>
    %147 = arith.divf %145, %146 : vector<8x128xf32>
    %148 = arith.mulf %139, %97 : vector<8x128xf32>
    %149 = arith.mulf %133, %141 : vector<8x128xf32>
    %150 = arith.addf %148, %149 : vector<8x128xf32>
    %151 = math.tanh %150 : vector<8x128xf32>
    %152 = arith.mulf %147, %151 : vector<8x128xf32>
    %153 = vector.broadcast %16 : vector<1x128xf32> to vector<8x128xf32>
    %154 = arith.mulf %152, %153 : vector<8x128xf32>
    %cst_43 = arith.constant dense<0.000000e+00> : vector<8xf32>
    %155 = vector.multi_reduction <add>, %154, %cst_43 [1] : vector<8x128xf32> to vector<8xf32>
    %156 = vector.shape_cast %155 : vector<8xf32> to vector<8x1xf32>
    %157 = vector.broadcast %17 : vector<1x1xf32> to vector<8x1xf32>
    %158 = arith.addf %156, %157 : vector<8x1xf32>
    %c2_i32 = arith.constant 2 : i32
    %159 = arith.addi %18, %c2_i32 : i32
    %160 = vector.broadcast %159 : i32 to vector<8x1xi32>
    %161 = arith.cmpi slt, %160, %14 : vector<8x1xi32>
    %cst_44 = arith.constant -1.000000e+30 : f32
    %162 = vector.broadcast %cst_44 : f32 to vector<8x1xf32>
    %163 = arith.select %161, %158, %162 : vector<8x1xi1>, vector<8x1xf32>
    %164 = arith.maximumf %111, %163 : vector<8x1xf32>
    %165 = arith.subf %111, %164 : vector<8x1xf32>
    %166 = math.exp %165 : vector<8x1xf32>
    %167 = arith.subf %158, %164 : vector<8x1xf32>
    %cst_45 = arith.constant -1.000000e+30 : f32
    %168 = vector.broadcast %cst_45 : f32 to vector<8x1xf32>
    %169 = arith.select %161, %167, %168 : vector<8x1xi1>, vector<8x1xf32>
    %170 = math.exp %169 : vector<8x1xf32>
    %171 = arith.mulf %166, %119 : vector<8x1xf32>
    %172 = arith.addf %171, %170 : vector<8x1xf32>
    %173 = vector.broadcast %166 : vector<8x1xf32> to vector<8x128xf32>
    %174 = arith.mulf %173, %124 : vector<8x128xf32>
    %175 = vector.broadcast %170 : vector<8x1xf32> to vector<8x128xf32>
    %176 = arith.mulf %175, %152 : vector<8x128xf32>
    %177 = arith.addf %174, %176 : vector<8x128xf32>
    %178 = vector.extract_strided_slice %8 {offsets = [24, 0], sizes = [8, 512], strides = [1, 1]} : vector<32x512xf32> to vector<8x512xf32>
    %cst_46 = arith.constant dense<0.000000e+00> : vector<8x512xf32>
    %179 = tpu.matmul %152, %15, %cst_46 {dimension_numbers = #tpu.dot_dimension_numbers<[1], [0], [0], [1], [0, 0, 1, 1], [], []>} : vector<8x128xf32>, vector<128x512xf32>, vector<8x512xf32> -> vector<8x512xf32>
    %180 = arith.addf %178, %179 : vector<8x512xf32>
    %181 = vector.extract_strided_slice %180 {offsets = [0, 0], sizes = [8, 128], strides = [1, 1]} : vector<8x512xf32> to vector<8x128xf32>
    %182 = arith.negf %181 : vector<8x128xf32>
    %183 = math.exp %182 : vector<8x128xf32>
    %cst_47 = arith.constant 1.000000e+00 : f32
    %184 = vector.broadcast %cst_47 : f32 to vector<8x128xf32>
    %185 = arith.addf %184, %183 : vector<8x128xf32>
    %186 = arith.divf %184, %185 : vector<8x128xf32>
    %187 = vector.extract_strided_slice %180 {offsets = [0, 128], sizes = [8, 128], strides = [1, 1]} : vector<8x512xf32> to vector<8x128xf32>
    %188 = arith.negf %187 : vector<8x128xf32>
    %189 = math.exp %188 : vector<8x128xf32>
    %cst_48 = arith.constant 1.000000e+00 : f32
    %190 = vector.broadcast %cst_48 : f32 to vector<8x128xf32>
    %191 = arith.addf %190, %189 : vector<8x128xf32>
    %192 = arith.divf %190, %191 : vector<8x128xf32>
    %193 = vector.extract_strided_slice %180 {offsets = [0, 256], sizes = [8, 128], strides = [1, 1]} : vector<8x512xf32> to vector<8x128xf32>
    %194 = math.tanh %193 : vector<8x128xf32>
    %195 = vector.extract_strided_slice %180 {offsets = [0, 384], sizes = [8, 128], strides = [1, 1]} : vector<8x512xf32> to vector<8x128xf32>
    %196 = arith.negf %195 : vector<8x128xf32>
    %197 = math.exp %196 : vector<8x128xf32>
    %cst_49 = arith.constant 1.000000e+00 : f32
    %198 = vector.broadcast %cst_49 : f32 to vector<8x128xf32>
    %199 = arith.addf %198, %197 : vector<8x128xf32>
    %200 = arith.divf %198, %199 : vector<8x128xf32>
    %201 = arith.mulf %192, %150 : vector<8x128xf32>
    %202 = arith.mulf %186, %194 : vector<8x128xf32>
    %203 = arith.addf %201, %202 : vector<8x128xf32>
    %204 = math.tanh %203 : vector<8x128xf32>
    %205 = arith.mulf %200, %204 : vector<8x128xf32>
    %206 = vector.broadcast %16 : vector<1x128xf32> to vector<8x128xf32>
    %207 = arith.mulf %205, %206 : vector<8x128xf32>
    %cst_50 = arith.constant dense<0.000000e+00> : vector<8xf32>
    %208 = vector.multi_reduction <add>, %207, %cst_50 [1] : vector<8x128xf32> to vector<8xf32>
    %209 = vector.shape_cast %208 : vector<8xf32> to vector<8x1xf32>
    %210 = vector.broadcast %17 : vector<1x1xf32> to vector<8x1xf32>
    %211 = arith.addf %209, %210 : vector<8x1xf32>
    %c3_i32 = arith.constant 3 : i32
    %212 = arith.addi %18, %c3_i32 : i32
    %213 = vector.broadcast %212 : i32 to vector<8x1xi32>
    %214 = arith.cmpi slt, %213, %14 : vector<8x1xi32>
    %cst_51 = arith.constant -1.000000e+30 : f32
    %215 = vector.broadcast %cst_51 : f32 to vector<8x1xf32>
    %216 = arith.select %214, %211, %215 : vector<8x1xi1>, vector<8x1xf32>
    %217 = arith.maximumf %164, %216 : vector<8x1xf32>
    %218 = arith.subf %164, %217 : vector<8x1xf32>
    %219 = math.exp %218 : vector<8x1xf32>
    %220 = arith.subf %211, %217 : vector<8x1xf32>
    %cst_52 = arith.constant -1.000000e+30 : f32
    %221 = vector.broadcast %cst_52 : f32 to vector<8x1xf32>
    %222 = arith.select %214, %220, %221 : vector<8x1xi1>, vector<8x1xf32>
    %223 = math.exp %222 : vector<8x1xf32>
    %224 = arith.mulf %219, %172 : vector<8x1xf32>
    %225 = arith.addf %224, %223 : vector<8x1xf32>
    %226 = vector.broadcast %219 : vector<8x1xf32> to vector<8x128xf32>
    %227 = arith.mulf %226, %177 : vector<8x128xf32>
    %228 = vector.broadcast %223 : vector<8x1xf32> to vector<8x128xf32>
    %229 = arith.mulf %228, %205 : vector<8x128xf32>
    %230 = arith.addf %227, %229 : vector<8x128xf32>
    %c0_53 = arith.constant 0 : index
    %c0_54 = arith.constant 0 : index
    %231 = vector.load %arg11[%c0_53, %c0_54] : memref<8x128xf32, #tpu.memory_space<vmem>>, vector<8x128xf32>
    tpu.vector_store %arg11[%c0_53, %c0_54], %205 {strides = array<i32>} : memref<8x128xf32, #tpu.memory_space<vmem>>, vector<8x128xf32>,
    %c0_55 = arith.constant 0 : index
    %c0_56 = arith.constant 0 : index
    %232 = vector.load %arg12[%c0_55, %c0_56] : memref<8x128xf32, #tpu.memory_space<vmem>>, vector<8x128xf32>
    tpu.vector_store %arg12[%c0_55, %c0_56], %203 {strides = array<i32>} : memref<8x128xf32, #tpu.memory_space<vmem>>, vector<8x128xf32>,
    %c0_57 = arith.constant 0 : index
    %c0_58 = arith.constant 0 : index
    %233 = vector.load %arg13[%c0_57, %c0_58] : memref<8x1xf32, #tpu.memory_space<vmem>>, vector<8x1xf32>
    tpu.vector_store %arg13[%c0_57, %c0_58], %217 {strides = array<i32>} : memref<8x1xf32, #tpu.memory_space<vmem>>, vector<8x1xf32>,
    %c0_59 = arith.constant 0 : index
    %c0_60 = arith.constant 0 : index
    %234 = vector.load %arg14[%c0_59, %c0_60] : memref<8x1xf32, #tpu.memory_space<vmem>>, vector<8x1xf32>
    tpu.vector_store %arg14[%c0_59, %c0_60], %225 {strides = array<i32>} : memref<8x1xf32, #tpu.memory_space<vmem>>, vector<8x1xf32>,
    %c0_61 = arith.constant 0 : index
    %c0_62 = arith.constant 0 : index
    %235 = vector.load %arg15[%c0_61, %c0_62] : memref<8x128xf32, #tpu.memory_space<vmem>>, vector<8x128xf32>
    tpu.vector_store %arg15[%c0_61, %c0_62], %230 {strides = array<i32>} : memref<8x128xf32, #tpu.memory_space<vmem>>, vector<8x128xf32>,
    %c1_i32_63 = arith.constant 1 : i32
    %236 = arith.cmpi eq, %arg0, %c1_i32_63 : i32
    %237 = arith.extui %236 : i1 to i32
    %c0_i32_64 = arith.constant 0 : i32
    %238 = arith.cmpi ne, %237, %c0_i32_64 : i32
    scf.if %238 {
      %239 = vector.broadcast %225 : vector<8x1xf32> to vector<8x128xf32>
      %240 = arith.divf %230, %239 : vector<8x128xf32>
      %c0_65 = arith.constant 0 : index
      %c0_66 = arith.constant 0 : index
      %241 = vector.load %arg8[%c0_65, %c0_66] : memref<128x4xf32, #tpu.memory_space<vmem>>, vector<128x4xf32>
      %cst_67 = arith.constant dense<0.000000e+00> : vector<8x4xf32>
      %242 = tpu.matmul %240, %241, %cst_67 {dimension_numbers = #tpu.dot_dimension_numbers<[1], [0], [0], [1], [0, 0, 1, 1], [], []>} : vector<8x128xf32>, vector<128x4xf32>, vector<8x4xf32> -> vector<8x4xf32>
      %c0_68 = arith.constant 0 : index
      %c0_69 = arith.constant 0 : index
      %243 = vector.load %arg9[%c0_68, %c0_69] : memref<1x4xf32, #tpu.memory_space<vmem>>, vector<1x4xf32>
      %244 = vector.broadcast %243 : vector<1x4xf32> to vector<8x4xf32>
      %245 = arith.addf %242, %244 : vector<8x4xf32>
      %c0_70 = arith.constant 0 : index
      %c0_71 = arith.constant 0 : index
      %246 = vector.load %arg10[%c0_70, %c0_71] : memref<8x4xf32, #tpu.memory_space<vmem>>, vector<8x4xf32>
      tpu.vector_store %arg10[%c0_70, %c0_71], %245 {strides = array<i32>} : memref<8x4xf32, #tpu.memory_space<vmem>>, vector<8x4xf32>,
    } else {
    }
    return
  }
  func.func @transform_0(%arg0: i32) -> (i32, i32) {
    %c0_i32 = arith.constant 0 : i32
    %c0_i32_0 = arith.constant 0 : i32
    %c0_i32_1 = arith.constant 0 : i32
    return %c0_i32, %c0_i32_0 : i32, i32
  }
  func.func @transform_1(%arg0: i32) -> (i32, i32) {
    %c0_i32 = arith.constant 0 : i32
    %c0_i32_0 = arith.constant 0 : i32
    return %arg0, %c0_i32 : i32, i32
  }
  func.func @transform_2(%arg0: i32) -> (i32, i32) {
    %c0_i32 = arith.constant 0 : i32
    %c0_i32_0 = arith.constant 0 : i32
    %c0_i32_1 = arith.constant 0 : i32
    return %c0_i32, %c0_i32_0 : i32, i32
  }
  func.func @transform_3(%arg0: i32) -> (i32, i32) {
    %c0_i32 = arith.constant 0 : i32
    %c0_i32_0 = arith.constant 0 : i32
    %c0_i32_1 = arith.constant 0 : i32
    return %c0_i32, %c0_i32_0 : i32, i32
  }
  func.func @transform_4(%arg0: i32) -> (i32, i32) {
    %c0_i32 = arith.constant 0 : i32
    %c0_i32_0 = arith.constant 0 : i32
    %c0_i32_1 = arith.constant 0 : i32
    return %c0_i32, %c0_i32_0 : i32, i32
  }
  func.func @transform_5(%arg0: i32) -> (i32, i32) {
    %c0_i32 = arith.constant 0 : i32
    %c0_i32_0 = arith.constant 0 : i32
    %c0_i32_1 = arith.constant 0 : i32
    return %c0_i32, %c0_i32_0 : i32, i32
  }
  func.func @transform_6(%arg0: i32) -> (i32, i32) {
    %c0_i32 = arith.constant 0 : i32
    %c0_i32_0 = arith.constant 0 : i32
    %c0_i32_1 = arith.constant 0 : i32
    return %c0_i32, %c0_i32_0 : i32, i32
  }
  func.func @transform_7(%arg0: i32) -> (i32, i32) {
    %c0_i32 = arith.constant 0 : i32
    %c0_i32_0 = arith.constant 0 : i32
    %c0_i32_1 = arith.constant 0 : i32
    return %c0_i32, %c0_i32_0 : i32, i32
  }
  func.func @transform_8(%arg0: i32) -> (i32, i32) {
    %c0_i32 = arith.constant 0 : i32
    %c0_i32_0 = arith.constant 0 : i32
    %c0_i32_1 = arith.constant 0 : i32
    return %c0_i32, %c0_i32_0 : i32, i32
  }
  func.func @transform_9(%arg0: i32) -> (i32, i32) {
    %c0_i32 = arith.constant 0 : i32
    %c0_i32_0 = arith.constant 0 : i32
    %c0_i32_1 = arith.constant 0 : i32
    return %c0_i32, %c0_i32_0 : i32, i32
  }
}

</mosaic_0001>

<bundles_post_ra>
// kernel: lstm_classifier_forward.1
= control target key start
LH: loop header
LB: loop body
LE: loop exit
PB: predicated region body
PF: predicated region fallthrough
CT: control target
= control target key end

     0   :  { %s1578_s11 = smov 0   ;;  %s2424_s0 = inlined_call_operand.vmem [shape: s32[8,1], index: 0, kind: input, shape index: {}]   ;;  %s2425_s1 = inlined_call_operand.vmem [shape: f32[64,16], index: 1, kind: input, shape index: {}]   ;;  %s2426_s2 = inlined_call_operand.vmem [shape: f32[16,512], index: 2, kind: input, shape index: {}]   ;;  %s2427_s3 = inlined_call_operand.vmem [shape: f32[1,512], index: 3, kind: input, shape index: {}]   ;;  %s2428_s4 = inlined_call_operand.vmem [shape: f32[128,512], index: 4, kind: input, shape index: {}]   ;;  %s2429_s5 = inlined_call_operand.vmem [shape: f32[1,128], index: 5, kind: input, shape index: {}]   ;;  %s2430_s6 = inlined_call_operand.<no memory space> [shape: f32[1,1], index: 6, kind: input, shape index: {}]   ;;  %s2431_s7 = inlined_call_operand.vmem [shape: f32[128,4], index: 7, kind: input, shape index: {}]   ;;  %s2432_s8 = inlined_call_operand.vmem [shape: f32[1,4], index: 8, kind: input, shape index: {}]   ;;  %s2433_s9 = inlined_call_operand.vmem [shape: f32[8,4], index: 9, kind: output, shape index: {}]  }
   0x1   :  { %v14_v0 = vstv %s2430_s6 }
   0x2   :  { %15 = vst [vmem:[#allocation7] sm:$0x1] %v14_v0 }
   0x3 LB: > { %s1584_s12 = sadd.s32 4294967295, %s1519_s11   ;;  %p1376_p0 = scmp.ge.s32.totalorder %s1519_s11, 1  ;;  %s1519_s11 = sphi %s1578_s11, %s21_s11  }
   0x4   : > { %p285_p1 = scmp.lt.s32.totalorder %s1519_s11, 3 }
   0x6   : > { %p286_p2 = pnand %p1376_p0, %p285_p1 }
   0x8   : > { %289 = sbr.rel (%p286_p2) target bundleno = 1270 (0x4f6), region = 56 }
   0xd   : > { %s1589_s13 = sshll.u32 %s1584_s12, 2  ;;  %p1379_p4 = scmp.ne.s32.totalorder %s1584_s12, 0 }
   0xe   : > { %p317_p3 = scmp.lt.s32.totalorder %s1589_s13, 7 }
   0xf   : > { %325 = sbr.rel (%p1379_p4) target bundleno = 26 (0x1a), region = 60 }
  0x10   : > { %s318_s6 = scalar_select %p317_p3, %s1589_s13, 7 }
  0x12   : > { %s1378_s14 = sshll.u32 %s318_s6, 3 }
  0x13   : > { %s1596_s17 = scalar_lea.vmem %s2425_s1, %s1378_s14 }
  0x14   : > { %v1521_v1 = vmov 0.0   ;;  %vm328_vm0 = vcmask 7168   ;;  %v1522_v2 = vmov -1e+30  }
  0x15   : > { %326 = vst [vmem:[#allocation2] sm:$0xff] %v1521_v1 }
  0x16   : > { %327 = vst [vmem:[#allocation3] sm:$0xff] %v1521_v1 }
  0x17   : > { %331 = vst [vmem:[#allocation6] sm:$0xff] %v1521_v1 }
  0x18   : > { %329 = vst.msk [vmem:[#allocation4] sm:$0xff] %vm328_vm0, %v1522_v2 }
  0x19   : > { %330 = vst.msk [vmem:[#allocation5] sm:$0xff] %vm328_vm0, %v1521_v1 }
  0x1a PF: > { %v340_v3 = vld [vmem:[%s2426_s2 + $0x20] sm:$0xff]  ;;  %v341_v4 = vld [vmem:[%s2426_s2 + $0x28] sm:$0xff]  ;;  %v342_v5 = vld [vmem:[%s2426_s2 + $0x30] sm:$0xff]  ;;  %vm354_vm1 = vcmask 130048   ;;  %s890_s22 = sadd.s32 1, %s1589_s13  ;;  %s1068_s23 = sadd.s32 2, %s1589_s13 }
  0x1b   : > { %381 = vmatpush.msra.mxu0 %v340_v3  ;;  %410 = vmatpush.msra.mxu1 %v341_v4  ;;  %v343_v6 = vld [vmem:[%s2426_s2 + $0x38] sm:$0xff]  ;;  %v336_v7 = vld [vmem:[%s2426_s2] sm:$0xff]  ;;  %v337_v8 = vld [vmem:[%s2426_s2 + $0x8] sm:$0xff]  ;;  %s1246_s24 = sadd.s32 3, %s1589_s13  ;;  %p1409_p5 = scmp.ne.s32.totalorder %s1584_s12, 1 }
  0x1c   : > { %439 = vmatpush.msra.mxu2 %v342_v5  ;;  %468 = vmatpush.msra.mxu3 %v343_v6  ;;  %v338_v9 = vld [vmem:[%s2426_s2 + $0x10] sm:$0xff]  ;;  %v339_v10 = vld [vmem:[%s2426_s2 + $0x18] sm:$0xff]  ;;  %v332_v11 = vld [vmem:[%s1596_s17] sm:$0xff] }
  0x1d   : > { %382 = vmatpush.msra.mxu0 %v336_v7  ;;  %411 = vmatpush.msra.mxu1 %v337_v8  ;;  %v1627_v12 = vld [vmem:[%s2428_s4 + $0x1e0] sm:$0xff]  ;;  %v1632_v13 = vld [vmem:[%s2428_s4 + $0x1e8] sm:$0xff]  ;;  %v1639_v14 = vld [vmem:[%s2428_s4 + $0x1f0] sm:$0xff] }
  0x1e   : > { %440 = vmatpush.msra.mxu2 %v338_v9  ;;  %469 = vmatpush.msra.mxu3 %v339_v10  ;;  %v1644_v15 = vld [vmem:[%s2428_s4 + $0x1f8] sm:$0xff]  ;;  %v1651_v16 = vld [vmem:[%s2428_s4 + $0x1c0] sm:$0xff]  ;;  %v1656_v17 = vld [vmem:[%s2428_s4 + $0x1c8] sm:$0xff] }
  0x1f   : > { %1380 = vmatmul.msk.f32.vlgmr.msra.gmra.mxu0 %vm354_vm1, %v332_v11  ;;  %1384 = vmatmul.msk.f32.vlgmr.msra.gmra.mxu1 %vm354_vm1, %v332_v11  ;;  %v1663_v18 = vld [vmem:[%s2428_s4 + $0x1d0] sm:$0xff]  ;;  %v1668_v19 = vld [vmem:[%s2428_s4 + $0x1d8] sm:$0xff]  ;;  %v1675_v20 = vld [vmem:[%s2428_s4 + $0x1a0] sm:$0xff] }
  0x20   : > { %1388 = vmatmul.msk.f32.vlgmr.msra.gmra.mxu2 %vm354_vm1, %v332_v11  ;;  %1392 = vmatmul.msk.f32.vlgmr.msra.gmra.mxu3 %vm354_vm1, %v332_v11  ;;  %v1680_v21 = vld [vmem:[%s2428_s4 + $0x1a8] sm:$0xff]  ;;  %v1687_v22 = vld [vmem:[%s2428_s4 + $0x1b0] sm:$0xff]  ;;  %v1692_v23 = vld [vmem:[%s2428_s4 + $0x1b8] sm:$0xff] }
  0x21   : > { %556 = vmatpush.msrb.mxu0 %v1627_v12  ;;  %576 = vmatpush.msrb.mxu1 %v1632_v13  ;;  %v1699_v24 = vld [vmem:[%s2428_s4 + $0x180] sm:$0xff]  ;;  %v1704_v25 = vld [vmem:[%s2428_s4 + $0x188] sm:$0xff]  ;;  %v1711_v26 = vld [vmem:[%s2428_s4 + $0x190] sm:$0xff] }
  0x22   : > { %596 = vmatpush.msrb.mxu2 %v1639_v14  ;;  %616 = vmatpush.msrb.mxu3 %v1644_v15  ;;  %v1716_v27 = vld [vmem:[%s2428_s4 + $0x198] sm:$0xff]  ;;  %v333_v28 = vld [vmem:[%s1596_s17 + $0x8] sm:$0xff]  ;;  %v1728_v29 = vld [vmem:[%s2428_s4 + $0x160] sm:$0xff] }
  0x23   : > { %557 = vmatpush.msrb.mxu0 %v1651_v16  ;;  %577 = vmatpush.msrb.mxu1 %v1656_v17  ;;  %v1733_v30 = vld [vmem:[%s2428_s4 + $0x168] sm:$0xff]  ;;  %v1740_v31 = vld [vmem:[%s2428_s4 + $0x170] sm:$0xff]  ;;  %v1745_v32 = vld [vmem:[%s2428_s4 + $0x178] sm:$0xff] }
  0x24   : > { %597 = vmatpush.msrb.mxu2 %v1663_v18  ;;  %617 = vmatpush.msrb.mxu3 %v1668_v19  ;;  %v1752_v33 = vld [vmem:[%s2428_s4 + $0x140] sm:$0xff]  ;;  %v1757_v34 = vld [vmem:[%s2428_s4 + $0x148] sm:$0xff]  ;;  %v1764_v35 = vld [vmem:[%s2428_s4 + $0x150] sm:$0xff] }
  0x25   : > { %558 = vmatpush.msrb.mxu0 %v1675_v20  ;;  %578 = vmatpush.msrb.mxu1 %v1680_v21  ;;  %v1769_v36 = vld [vmem:[%s2428_s4 + $0x158] sm:$0xff]  ;;  %v1776_v37 = vld [vmem:[%s2428_s4 + $0x120] sm:$0xff]  ;;  %v1781_v38 = vld [vmem:[%s2428_s4 + $0x128] sm:$0xff] }
  0x26   : > { %598 = vmatpush.msrb.mxu2 %v1687_v22  ;;  %618 = vmatpush.msrb.mxu3 %v1692_v23  ;;  %v1788_v39 = vld [vmem:[%s2428_s4 + $0x130] sm:$0xff]  ;;  %v1793_v40 = vld [vmem:[%s2428_s4 + $0x138] sm:$0xff]  ;;  %v1800_v41 = vld [vmem:[%s2428_s4 + $0x100] sm:$0xff] }
  0x27   : > { %559 = vmatpush.msrb.mxu0 %v1699_v24  ;;  %579 = vmatpush.msrb.mxu1 %v1704_v25  ;;  %v1805_v42 = vld [vmem:[%s2428_s4 + $0x108] sm:$0xff]  ;;  %v1812_v43 = vld [vmem:[%s2428_s4 + $0x110] sm:$0xff]  ;;  %v1817_v44 = vld [vmem:[%s2428_s4 + $0x118] sm:$0xff] }
  0x28   : > { %599 = vmatpush.msrb.mxu2 %v1711_v26  ;;  %619 = vmatpush.msrb.mxu3 %v1716_v27  ;;  %v334_v45 = vld [vmem:[%s1596_s17 + $0x10] sm:$0xff]  ;;  %v1829_v46 = vld [vmem:[%s2428_s4 + $0xe0] sm:$0xff]  ;;  %v1834_v47 = vld [vmem:[%s2428_s4 + $0xe8] sm:$0xff] }
  0x29   : > { %1381 = vmatmul.msk.f32.gmra.mxu0 %vm354_vm1, %v333_v28  ;;  %1385 = vmatmul.msk.f32.gmra.mxu1 %vm354_vm1, %v333_v28  ;;  %v1841_v48 = vld [vmem:[%s2428_s4 + $0xf0] sm:$0xff]  ;;  %v1846_v49 = vld [vmem:[%s2428_s4 + $0xf8] sm:$0xff]  ;;  %v1851_v50 = vld [vmem:[%s2428_s4 + $0xc0] sm:$0xff] }
  0x2a   : > { %1389 = vmatmul.msk.f32.gmra.mxu2 %vm354_vm1, %v333_v28  ;;  %1393 = vmatmul.msk.f32.gmra.mxu3 %vm354_vm1, %v333_v28  ;;  %v1858_v51 = vld [vmem:[%s2428_s4 + $0xc8] sm:$0xff]  ;;  %v1865_v52 = vld [vmem:[%s2428_s4 + $0xd0] sm:$0xff]  ;;  %v1870_v53 = vld [vmem:[%s2428_s4 + $0xd8] sm:$0xff] }
  0x2b   : > { %560 = vmatpush.msrb.mxu0 %v1728_v29  ;;  %580 = vmatpush.msrb.mxu1 %v1733_v30  ;;  %2462 = vst [vmem:[#allocation8_spill] sm:$0xff] %v1865_v52  ;;  %v1877_v54 = vld [vmem:[%s2428_s4 + $0xa0] sm:$0xff]  ;;  %v1882_v55 = vld [vmem:[%s2428_s4 + $0xa8] sm:$0xff]  ;;  %v1889_v56 = vld [vmem:[%s2428_s4 + $0xb0] sm:$0xff] }
  0x2c   : > { %600 = vmatpush.msrb.mxu2 %v1740_v31  ;;  %620 = vmatpush.msrb.mxu3 %v1745_v32  ;;  %2463 = vst [vmem:[#allocation9_spill] sm:$0xff] %v1870_v53  ;;  %v1894_v57 = vld [vmem:[%s2428_s4 + $0xb8] sm:$0xff]  ;;  %v1901_v58 = vld [vmem:[%s2428_s4 + $0x80] sm:$0xff]  ;;  %v1906_v59 = vld [vmem:[%s2428_s4 + $0x88] sm:$0xff] }
  0x2d   : > { %561 = vmatpush.msrb.mxu0 %v1752_v33  ;;  %581 = vmatpush.msrb.mxu1 %v1757_v34  ;;  %2464 = vst [vmem:[#allocation10_spill] sm:$0xff] %v1877_v54  ;;  %v1913_v60 = vld [vmem:[%s2428_s4 + $0x90] sm:$0xff]  ;;  %v1918_v61 = vld [vmem:[%s2428_s4 + $0x98] sm:$0xff]  ;;  %v1930_v63 = vld [vmem:[%s2428_s4 + $0x60] sm:$0xff] }
  0x2e   : > { %601 = vmatpush.msrb.mxu2 %v1764_v35  ;;  %621 = vmatpush.msrb.mxu3 %v1769_v36  ;;  %2465 = vst [vmem:[#allocation11_spill] sm:$0xff] %v1882_v55  ;;  %v335_v62 = vld [vmem:[%s1596_s17 + $0x18] sm:$0xff]  ;;  %v1935_v0 = vld [vmem:[%s2428_s4 + $0x68] sm:$0xff]  ;;  %v1942_v1 = vld [vmem:[%s2428_s4 + $0x70] sm:$0xff] }
  0x2f   : > { %562 = vmatpush.msrb.mxu0 %v1776_v37  ;;  %582 = vmatpush.msrb.mxu1 %v1781_v38  ;;  %2466 = vst [vmem:[#allocation12_spill] sm:$0xff] %v1889_v56  ;;  %v1947_v2 = vld [vmem:[%s2428_s4 + $0x78] sm:$0xff]  ;;  %v1954_v3 = vld [vmem:[%s2428_s4 + $0x40] sm:$0xff]  ;;  %v1959_v4 = vld [vmem:[%s2428_s4 + $0x48] sm:$0xff] }
  0x30   : > { %602 = vmatpush.msrb.mxu2 %v1788_v39  ;;  %622 = vmatpush.msrb.mxu3 %v1793_v40  ;;  %2467 = vst [vmem:[#allocation13_spill] sm:$0xff] %v1894_v57  ;;  %v1966_v5 = vld [vmem:[%s2428_s4 + $0x50] sm:$0xff]  ;;  %v1971_v6 = vld [vmem:[%s2428_s4 + $0x58] sm:$0xff]  ;;  %v1978_v7 = vld [vmem:[%s2428_s4 + $0x20] sm:$0xff] }
  0x31   : > { %563 = vmatpush.msrb.mxu0 %v1800_v41  ;;  %583 = vmatpush.msrb.mxu1 %v1805_v42  ;;  %2468 = vst [vmem:[#allocation14_spill] sm:$0xff] %v1901_v58  ;;  %v1983_v8 = vld [vmem:[%s2428_s4 + $0x28] sm:$0xff]  ;;  %v1990_v9 = vld [vmem:[%s2428_s4 + $0x30] sm:$0xff]  ;;  %v1995_v10 = vld [vmem:[%s2428_s4 + $0x38] sm:$0xff] }
  0x32   : > { %603 = vmatpush.msrb.mxu2 %v1812_v43  ;;  %623 = vmatpush.msrb.mxu3 %v1817_v44  ;;  %2469 = vst [vmem:[#allocation15_spill] sm:$0xff] %v1906_v59  ;;  %v2002_v11 = vld [vmem:[%s2428_s4] sm:$0xff]  ;;  %v2007_v28 = vld [vmem:[%s2428_s4 + $0x8] sm:$0xff] }
  0x33   : > { %1382 = vmatmul.msk.f32.gmra.mxu0 %vm354_vm1, %v334_v45  ;;  %1386 = vmatmul.msk.f32.gmra.mxu1 %vm354_vm1, %v334_v45  ;;  %2470 = vst [vmem:[#allocation16_spill] sm:$0xff] %v1913_v60 }
  0x34   : > { %1390 = vmatmul.msk.f32.gmra.mxu2 %vm354_vm1, %v334_v45  ;;  %1394 = vmatmul.msk.f32.gmra.mxu3 %vm354_vm1, %v334_v45  ;;  %2471 = vst [vmem:[#allocation17_spill] sm:$0xff] %v1918_v61  ;;  %v2014_v45 = vld [vmem:[%s2428_s4 + $0x10] sm:$0xff] }
  0x35   : > { %564 = vmatpush.msrb.mxu0 %v1829_v46  ;;  %584 = vmatpush.msrb.mxu1 %v1834_v47  ;;  %2472 = vst [vmem:[#allocation18_spill] sm:$0xff] %v1930_v63 }
  0x36   : > { %604 = vmatpush.msrb.mxu2 %v1841_v48  ;;  %624 = vmatpush.msrb.mxu3 %v1846_v49  ;;  %2473 = vst [vmem:[#allocation19_spill] sm:$0xff] %v1935_v0 }
  0x37   : > { %565 = vmatpush.msrb.mxu0 %v1851_v50  ;;  %585 = vmatpush.msrb.mxu1 %v1858_v51  ;;  %2474 = vst [vmem:[#allocation20_spill] sm:$0xff] %v1942_v1 }
  0x38   : > { %605 = vmatpush.msrb.mxu2 %v1865_v52  ;;  %625 = vmatpush.msrb.mxu3 %v1870_v53  ;;  %2475 = vst [vmem:[#allocation21_spill] sm:$0xff] %v1947_v2 }
  0x39   : > { %566 = vmatpush.msrb.mxu0 %v1877_v54  ;;  %586 = vmatpush.msrb.mxu1 %v1882_v55  ;;  %2476 = vst [vmem:[#allocation22_spill] sm:$0xff] %v1954_v3 }
  0x3a   : > { %606 = vmatpush.msrb.mxu2 %v1889_v56  ;;  %626 = vmatpush.msrb.mxu3 %v1894_v57  ;;  %2477 = vst [vmem:[#allocation23_spill] sm:$0xff] %v1959_v4 }
  0x3b   : > { %567 = vmatpush.msrb.mxu0 %v1901_v58  ;;  %587 = vmatpush.msrb.mxu1 %v1906_v59  ;;  %2478 = vst [vmem:[#allocation24_spill] sm:$0xff] %v1966_v5 }
  0x3c   : > { %607 = vmatpush.msrb.mxu2 %v1913_v60  ;;  %627 = vmatpush.msrb.mxu3 %v1918_v61  ;;  %2479 = vst [vmem:[#allocation25_spill] sm:$0xff] %v1971_v6 }
  0x3d   : > { %1383 = vmatmul.msk.f32.gmra.mxu0 %vm354_vm1, %v335_v62  ;;  %1387 = vmatmul.msk.f32.gmra.mxu1 %vm354_vm1, %v335_v62  ;;  %2480 = vst [vmem:[#allocation26_spill] sm:$0xff] %v1978_v7 }
  0x3e   : > { %1391 = vmatmul.msk.f32.gmra.mxu2 %vm354_vm1, %v335_v62  ;;  %1395 = vmatmul.msk.f32.gmra.mxu3 %vm354_vm1, %v335_v62  ;;  %2481 = vst [vmem:[#allocation27_spill] sm:$0xff] %v1983_v8  ;;  %v2019_v62 = vld [vmem:[%s2428_s4 + $0x18] sm:$0xff] }
  0x3f   : > { %568 = vmatpush.msrb.mxu0 %v1930_v63  ;;  %588 = vmatpush.msrb.mxu1 %v1935_v0  ;;  %2482 = vst [vmem:[#allocation28_spill] sm:$0xff] %v1990_v9 }
  0x40   : > { %608 = vmatpush.msrb.mxu2 %v1942_v1  ;;  %628 = vmatpush.msrb.mxu3 %v1947_v2  ;;  %2483 = vst [vmem:[#allocation29_spill] sm:$0xff] %v1995_v10 }
  0x41   : > { %569 = vmatpush.msrb.mxu0 %v1954_v3  ;;  %589 = vmatpush.msrb.mxu1 %v1959_v4  ;;  %2484 = vst [vmem:[#allocation30_spill] sm:$0xff] %v2002_v11 }
  0x42   : > { %609 = vmatpush.msrb.mxu2 %v1966_v5  ;;  %629 = vmatpush.msrb.mxu3 %v1971_v6  ;;  %2485 = vst [vmem:[#allocation31_spill] sm:$0xff] %v2007_v28  ;;  %v483_v6 = vld [vmem:[#allocation2] sm:$0xff] }
  0x43   : > { %570 = vmatpush.msrb.mxu0 %v1978_v7  ;;  %590 = vmatpush.msrb.mxu1 %v1983_v8  ;;  %2486 = vst [vmem:[#allocation32_spill] sm:$0xff] %v2014_v45 }
  0x44   : > { %2487 = vst [vmem:[#allocation33_spill] sm:$0xff] %v2019_v62  ;;  %610 = vmatpush.msrb.mxu2 %v1990_v9  ;;  %630 = vmatpush.msrb.mxu3 %v1995_v10 }
  0x45   : > { %571 = vmatpush.msrb.mxu0 %v2002_v11  ;;  %591 = vmatpush.msrb.mxu1 %v2007_v28 }
  0x46   : > { %611 = vmatpush.msrb.mxu2 %v2014_v45  ;;  %631 = vmatpush.msrb.mxu3 %v2019_v62 }
  0x47   : > { %572 = vmatmul.f32.vlgmr.msrb.gmra.mxu0 %v483_v6  ;;  %592 = vmatmul.f32.vlgmr.msrb.gmra.mxu1 %v483_v6 }
  0x48   : > { %612 = vmatmul.f32.vlgmr.msrb.gmra.mxu2 %v483_v6  ;;  %632 = vmatmul.f32.vlgmr.msrb.gmra.mxu3 %v483_v6  ;;  %v2488_v6 = vld [vmem:[#allocation25_spill] sm:$0xff] }
  0x49   : > { %739 = vmatpush.msra.mxu0 %v1627_v12  ;;  %759 = vmatpush.msra.mxu1 %v1632_v13 }
  0x4a   : > { %779 = vmatpush.msra.mxu2 %v1639_v14  ;;  %799 = vmatpush.msra.mxu3 %v1644_v15 }
  0x4b   : > { %740 = vmatpush.msra.mxu0 %v1651_v16  ;;  %760 = vmatpush.msra.mxu1 %v1656_v17 }
  0x4c   : > { %780 = vmatpush.msra.mxu2 %v1663_v18  ;;  %800 = vmatpush.msra.mxu3 %v1668_v19 }
  0x4d   : > { %741 = vmatpush.msra.mxu0 %v1675_v20  ;;  %761 = vmatpush.msra.mxu1 %v1680_v21 }
  0x4e   : > { %781 = vmatpush.msra.mxu2 %v1687_v22  ;;  %801 = vmatpush.msra.mxu3 %v1692_v23 }
  0x4f   : > { %742 = vmatpush.msra.mxu0 %v1699_v24  ;;  %762 = vmatpush.msra.mxu1 %v1704_v25 }
  0x50   : > { %782 = vmatpush.msra.mxu2 %v1711_v26  ;;  %802 = vmatpush.msra.mxu3 %v1716_v27 }
  0x51   : > { %743 = vmatpush.msra.mxu0 %v1728_v29  ;;  %763 = vmatpush.msra.mxu1 %v1733_v30 }
  0x52   : > { %783 = vmatpush.msra.mxu2 %v1740_v31  ;;  %803 = vmatpush.msra.mxu3 %v1745_v32 }
  0x53   : > { %744 = vmatpush.msra.mxu0 %v1752_v33  ;;  %764 = vmatpush.msra.mxu1 %v1757_v34 }
  0x54   : > { %784 = vmatpush.msra.mxu2 %v1764_v35  ;;  %804 = vmatpush.msra.mxu3 %v1769_v36 }
  0x55   : > { %745 = vmatpush.msra.mxu0 %v1776_v37  ;;  %765 = vmatpush.msra.mxu1 %v1781_v38 }
  0x56   : > { %785 = vmatpush.msra.mxu2 %v1788_v39  ;;  %805 = vmatpush.msra.mxu3 %v1793_v40 }
  0x57   : > { %746 = vmatpush.msra.mxu0 %v1800_v41  ;;  %766 = vmatpush.msra.mxu1 %v1805_v42 }
  0x58   : > { %786 = vmatpush.msra.mxu2 %v1812_v43  ;;  %806 = vmatpush.msra.mxu3 %v1817_v44 }
  0x59   : > { %747 = vmatpush.msra.mxu0 %v1829_v46  ;;  %767 = vmatpush.msra.mxu1 %v1834_v47 }
  0x5a   : > { %787 = vmatpush.msra.mxu2 %v1841_v48  ;;  %807 = vmatpush.msra.mxu3 %v1846_v49 }
  0x5b   : > { %748 = vmatpush.msra.mxu0 %v1851_v50  ;;  %768 = vmatpush.msra.mxu1 %v1858_v51 }
  0x5c   : > { %788 = vmatpush.msra.mxu2 %v1865_v52  ;;  %808 = vmatpush.msra.mxu3 %v1870_v53 }
  0x5d   : > { %749 = vmatpush.msra.mxu0 %v1877_v54  ;;  %769 = vmatpush.msra.mxu1 %v1882_v55 }
  0x5e   : > { %789 = vmatpush.msra.mxu2 %v1889_v56  ;;  %809 = vmatpush.msra.mxu3 %v1894_v57 }
  0x5f   : > { %750 = vmatpush.msra.mxu0 %v1901_v58  ;;  %770 = vmatpush.msra.mxu1 %v1906_v59 }
  0x60   : > { %790 = vmatpush.msra.mxu2 %v1913_v60  ;;  %810 = vmatpush.msra.mxu3 %v1918_v61 }
  0x61   : > { %751 = vmatpush.msra.mxu0 %v1930_v63  ;;  %771 = vmatpush.msra.mxu1 %v1935_v0 }
  0x62   : > { %791 = vmatpush.msra.mxu2 %v1942_v1  ;;  %811 = vmatpush.msra.mxu3 %v1947_v2 }
  0x63   : > { %752 = vmatpush.msra.mxu0 %v1954_v3  ;;  %772 = vmatpush.msra.mxu1 %v1959_v4 }
  0x64   : > { %792 = vmatpush.msra.mxu2 %v1966_v5  ;;  %812 = vmatpush.msra.mxu3 %v2488_v6 }
  0x65   : > { %753 = vmatpush.msra.mxu0 %v1978_v7  ;;  %773 = vmatpush.msra.mxu1 %v1983_v8 }
  0x66   : > { %793 = vmatpush.msra.mxu2 %v1990_v9  ;;  %813 = vmatpush.msra.mxu3 %v1995_v10 }
  0x67   : > { %754 = vmatpush.msra.mxu0 %v2002_v11  ;;  %774 = vmatpush.msra.mxu1 %v2007_v28 }
  0x68   : > { %794 = vmatpush.msra.mxu2 %v2014_v45  ;;  %814 = vmatpush.msra.mxu3 %v2019_v62 }
  0x69   : > { %917 = vmatpush.msrb.mxu0 %v1627_v12  ;;  %937 = vmatpush.msrb.mxu1 %v1632_v13 }
  0x6a   : > { %957 = vmatpush.msrb.mxu2 %v1639_v14  ;;  %977 = vmatpush.msrb.mxu3 %v1644_v15 }
  0x6b   : > { %918 = vmatpush.msrb.mxu0 %v1651_v16  ;;  %938 = vmatpush.msrb.mxu1 %v1656_v17 }
  0x6c   : > { %958 = vmatpush.msrb.mxu2 %v1663_v18  ;;  %978 = vmatpush.msrb.mxu3 %v1668_v19 }
  0x6d   : > { %919 = vmatpush.msrb.mxu0 %v1675_v20  ;;  %939 = vmatpush.msrb.mxu1 %v1680_v21 }
  0x6e   : > { %959 = vmatpush.msrb.mxu2 %v1687_v22  ;;  %979 = vmatpush.msrb.mxu3 %v1692_v23 }
  0x6f   : > { %920 = vmatpush.msrb.mxu0 %v1699_v24  ;;  %940 = vmatpush.msrb.mxu1 %v1704_v25 }
  0x70   : > { %960 = vmatpush.msrb.mxu2 %v1711_v26  ;;  %980 = vmatpush.msrb.mxu3 %v1716_v27 }
  0x71   : > { %921 = vmatpush.msrb.mxu0 %v1728_v29  ;;  %941 = vmatpush.msrb.mxu1 %v1733_v30 }
  0x72   : > { %961 = vmatpush.msrb.mxu2 %v1740_v31  ;;  %981 = vmatpush.msrb.mxu3 %v1745_v32 }
  0x73   : > { %922 = vmatpush.msrb.mxu0 %v1752_v33  ;;  %942 = vmatpush.msrb.mxu1 %v1757_v34 }
  0x74   : > { %962 = vmatpush.msrb.mxu2 %v1764_v35  ;;  %982 = vmatpush.msrb.mxu3 %v1769_v36 }
  0x75   : > { %923 = vmatpush.msrb.mxu0 %v1776_v37  ;;  %943 = vmatpush.msrb.mxu1 %v1781_v38 }
  0x76   : > { %963 = vmatpush.msrb.mxu2 %v1788_v39  ;;  %983 = vmatpush.msrb.mxu3 %v1793_v40 }
  0x77   : > { %924 = vmatpush.msrb.mxu0 %v1800_v41  ;;  %944 = vmatpush.msrb.mxu1 %v1805_v42 }
  0x78   : > { %964 = vmatpush.msrb.mxu2 %v1812_v43  ;;  %984 = vmatpush.msrb.mxu3 %v1817_v44 }
  0x79   : > { %925 = vmatpush.msrb.mxu0 %v1829_v46  ;;  %945 = vmatpush.msrb.mxu1 %v1834_v47 }
  0x7a   : > { %965 = vmatpush.msrb.mxu2 %v1841_v48  ;;  %985 = vmatpush.msrb.mxu3 %v1846_v49 }
  0x7b   : > { %926 = vmatpush.msrb.mxu0 %v1851_v50  ;;  %946 = vmatpush.msrb.mxu1 %v1858_v51 }
  0x7c   : > { %966 = vmatpush.msrb.mxu2 %v1865_v52  ;;  %986 = vmatpush.msrb.mxu3 %v1870_v53 }
  0x7d   : > { %927 = vmatpush.msrb.mxu0 %v1877_v54  ;;  %947 = vmatpush.msrb.mxu1 %v1882_v55 }
  0x7e   : > { %967 = vmatpush.msrb.mxu2 %v1889_v56  ;;  %987 = vmatpush.msrb.mxu3 %v1894_v57 }
  0x7f   : > { %928 = vmatpush.msrb.mxu0 %v1901_v58  ;;  %948 = vmatpush.msrb.mxu1 %v1906_v59 }
  0x80   : > { %968 = vmatpush.msrb.mxu2 %v1913_v60  ;;  %988 = vmatpush.msrb.mxu3 %v1918_v61 }
  0x81   : > { %929 = vmatpush.msrb.mxu0 %v1930_v63  ;;  %949 = vmatpush.msrb.mxu1 %v1935_v0 }
  0x82   : > { %969 = vmatpush.msrb.mxu2 %v1942_v1  ;;  %989 = vmatpush.msrb.mxu3 %v1947_v2 }
  0x83   : > { %930 = vmatpush.msrb.mxu0 %v1954_v3  ;;  %950 = vmatpush.msrb.mxu1 %v1959_v4 }
  0x84   : > { %970 = vmatpush.msrb.mxu2 %v1966_v5  ;;  %990 = vmatpush.msrb.mxu3 %v2488_v6 }
  0x85   : > { %931 = vmatpush.msrb.mxu0 %v1978_v7  ;;  %951 = vmatpush.msrb.mxu1 %v1983_v8  ;;  %v344_v7 = vld [vmem:[%s2427_s3] sm:$0xf] }
  0x86   : > { %971 = vmatpush.msrb.mxu2 %v1990_v9  ;;  %991 = vmatpush.msrb.mxu3 %v1995_v10  ;;  %v346_v3 = vperm.slane %v344_v7, 0  ;;  %v347_v9 = vperm.slane %v344_v7, 1 }
  0x87   : > { %932 = vmatpush.msrb.mxu0 %v2002_v11  ;;  %952 = vmatpush.msrb.mxu1 %v2007_v28  ;;  %v348_v28 = vperm.slane %v344_v7, 2 }
  0x88   : > { %972 = vmatpush.msrb.mxu2 %v2014_v45  ;;  %992 = vmatpush.msrb.mxu3 %v2019_v62  ;;  %v349_v45 = vperm.slane %v344_v7, 3 }
  0x9c   : > { %v384_v4 = vpop.f32.mrf.mxu0  ;;  %v413_v5 = vpop.f32.mrf.mxu1 }
  0xa3   : > { %v442_v6 = vpop.f32.mrf.mxu2  ;;  %v471_v8 = vpop.f32.mrf.mxu3 }
  0xa4   : > { %v472_v53 = vadd.f32 %v471_v8, %v349_v45 }
  0xa6   : > { %v387_v2 = vpop.f32.mrf.mxu0  ;;  %v416_v10 = vpop.f32.mrf.mxu1 }
  0xa7   : > { %v2158_v1 = vadd.f32 %v387_v2, %v346_v3  ;;  %v2160_v11 = vadd.f32 %v416_v10, %v347_v9 }
  0xa9   : > { %2489 = vst [vmem:[#allocation34_spill] sm:$0xff] %v2158_v1 }
  0xaa   : > { %2490 = vst [vmem:[#allocation35_spill] sm:$0xff] %v2160_v11 }
  0xad   : > { %v445_v0 = vpop.f32.mrf.mxu2  ;;  %v474_v62 = vpop.f32.mrf.mxu3 }
  0xae   : > { %v2162_v63 = vadd.f32 %v445_v0, %v348_v28  ;;  %v2164_v61 = vadd.f32 %v474_v62, %v349_v45 }
  0xb0   : > { %2491 = vst [vmem:[#allocation36_spill] sm:$0xff] %v2162_v63  ;;  %v390_v60 = vpop.f32.mrf.mxu0  ;;  %v419_v59 = vpop.f32.mrf.mxu1 }
  0xb1   : > { %2492 = vst [vmem:[#allocation37_spill] sm:$0xff] %v2164_v61  ;;  %v2166_v58 = vadd.f32 %v390_v60, %v346_v3  ;;  %v2168_v57 = vadd.f32 %v419_v59, %v347_v9  ;;  %v385_v59 = vadd.f32 %v384_v4, %v346_v3 }
  0xb3   : > { %2493 = vst [vmem:[#allocation38_spill] sm:$0xff] %v2166_v58 }
  0xb4   : > { %2494 = vst [vmem:[#allocation39_spill] sm:$0xff] %v2168_v57  ;;  %v414_v57 = vadd.f32 %v413_v5, %v347_v9  ;;  %v443_v5 = vadd.f32 %v442_v6, %v348_v28 }
  0xb7   : > { %v448_v56 = vpop.f32.mrf.mxu2  ;;  %v477_v55 = vpop.f32.mrf.mxu3 }
  0xb8   : > { %v2170_v2 = vadd.f32 %v448_v56, %v348_v28  ;;  %v2172_v10 = vadd.f32 %v477_v55, %v349_v45 }
  0xba   : > { %2495 = vst [vmem:[#allocation40_spill] sm:$0xff] %v2170_v2  ;;  %v393_v11 = vpop.f32.mrf.mxu0  ;;  %v422_v7 = vpop.f32.mrf.mxu1 }
  0xbb   : > { %2496 = vst [vmem:[#allocation41_spill] sm:$0xff] %v2172_v10  ;;  %v2174_v1 = vadd.f32 %v393_v11, %v346_v3  ;;  %v2176_v0 = vadd.f32 %v422_v7, %v347_v9 }
  0xbd   : > { %2497 = vst [vmem:[#allocation42_spill] sm:$0xff] %v2174_v1 }
  0xbe   : > { %2498 = vst [vmem:[#allocation43_spill] sm:$0xff] %v2176_v0 }
  0xc1   : > { %v451_v62 = vpop.f32.mrf.mxu2  ;;  %v480_v63 = vpop.f32.mrf.mxu3 }
  0xc2   : > { %v2178_v61 = vadd.f32 %v451_v62, %v348_v28  ;;  %v2180_v60 = vadd.f32 %v480_v63, %v349_v45 }
  0xc4   : > { %2499 = vst [vmem:[#allocation44_spill] sm:$0xff] %v2178_v61  ;;  %v573_v58 = vpop.f32.mrf.mxu0  ;;  %v593_v54 = vpop.f32.mrf.mxu1 }
  0xc5   : > { %2500 = vst [vmem:[#allocation45_spill] sm:$0xff] %v2180_v60  ;;  %v636_v56 = vadd.f32 %v573_v58, %v385_v59  ;;  %v637_v2 = vadd.f32 %v593_v54, %v414_v57 }
  0xc7   : > { %v1397_v55 = vmul.f32 -1.442695, %v636_v56  ;;  %v1398_v10 = vmul.f32 -1.442695, %v637_v2 }
  0xc9   : > { %1429 = vpow2.f32 %v1397_v55 }
  0xca   : > { %1431 = vpow2.f32 %v1398_v10 }
  0xcb   : > { %v633_v11 = vpop.f32.mrf.mxu3  ;;  %v613_v3 = vpop.f32.mrf.mxu2 }
  0xcc   : > { %v639_v7 = vadd.f32 %v633_v11, %v472_v53  ;;  %v638_v57 = vadd.f32 %v613_v3, %v443_v5 }
  0xce   : > { %v1399_v0 = vmul.f32 -1.442695, %v639_v7 }
  0xcf   : > { %v1430_v1 = vpop.eup %1429 }
  0xd0   : > { %v1432_v52 = vpop.eup %1431  ;;  %v643_v62 = vadd.f32 1.0, %v1430_v1  ;;  %1433 = vpow2.f32 %v1399_v0 }
  0xd1   : > { %v662_v63 = vadd.f32 1.0, %v1432_v52 }
  0xd2   : > { %1435 = vrcp.f32 %v643_v62  ;;  %v655_v10 = vand.u32 2147483648, %v643_v62  ;;  %v653_v52 = vand.u32 2147483647, %v643_v62  ;;  %vm649_vm4 = vweird.f32 %v643_v62 }
  0xd3   : > { %1437 = vrcp.f32 %v662_v63  ;;  %v674_v59 = vand.u32 2147483648, %v662_v63  ;;  %v672_v56 = vand.u32 2147483647, %v662_v63  ;;  %vm668_vm5 = vweird.f32 %v662_v63 }
  0xd4   : > { %v656_v6 = vor.u32 1.1754944e-38, %v655_v10  ;;  %vm654_vm8 = vcmp.eq.f32.partialorder %v653_v52, 8.507059e+37 }
  0xd5   : > { %v675_v3 = vor.u32 1.1754944e-38, %v674_v59  ;;  %vm673_vm9 = vcmp.eq.f32.partialorder %v672_v56, 8.507059e+37 }
  0xd6   : > { %v1434_v4 = vpop.eup %1433 }
  0xd7   : > { %v682_v58 = vadd.f32 1.0, %v1434_v4  ;;  %v484_v4 = vld [vmem:[#allocation3] sm:$0xff] }
  0xd8   : > { %v1436_v54 = vpop.eup %1435 }
  0xd9   : > { %v1438_v9 = vpop.eup %1437  ;;  %v645_v2 = vmul.f32 %v1436_v54, %v643_v62  ;;  %1439 = vrcp.f32 %v682_v58  ;;  %vm650_vm2 = vweird.f32 %v1436_v54  ;;  %v694_v10 = vand.u32 2147483648, %v682_v58 }
  0xda   : > { %v664_v8 = vmul.f32 %v1438_v9, %v662_v63  ;;  %1441 = vtanh.f32 %v638_v57  ;;  %vm669_vm3 = vweird.f32 %v1438_v9  ;;  %vm651_vm6 = vmor %vm649_vm4, %vm650_vm2  ;;  %vm688_vm11 = vweird.f32 %v682_v58 }
  0xdb   : > { %v646_v45 = vsub.f32 1.0, %v645_v2  ;;  %vm670_vm7 = vmor %vm668_vm5, %vm669_vm3  ;;  %v692_v59 = vand.u32 2147483647, %v682_v58  ;;  %v695_v52 = vor.u32 1.1754944e-38, %v694_v10 }
  0xdc   : > { %v665_v53 = vsub.f32 1.0, %v664_v8 }
  0xdd   : > { %v647_v1 = vmul.f32 %v1436_v54, %v646_v45  ;;  %vm693_vm13 = vcmp.eq.f32.partialorder %v692_v59, 8.507059e+37 }
  0xde   : > { %v666_v0 = vmul.f32 %v1438_v9, %v665_v53 }
  0xdf   : > { %v1440_v55 = vpop.eup %1439  ;;  %v648_v28 = vadd.f32 %v1436_v54, %v647_v1 }
  0xe0   : > { %v667_v11 = vadd.f32 %v1438_v9, %v666_v0  ;;  %v684_v7 = vmul.f32 %v1440_v55, %v682_v58  ;;  %v1442_v57 = vpop.eup %1441  ;;  %vm689_vm10 = vweird.f32 %v1440_v55 }
  0xe1   : > { %v652_v5 = vsel %vm651_vm6, %v1436_v54, %v648_v28  ;;  %vm690_vm12 = vmor %vm688_vm11, %vm689_vm10 }
  0xe2   : > { %v657_v2 = vsel %vm654_vm8, %v656_v6, %v652_v5  ;;  %v671_v8 = vsel %vm670_vm7, %v1438_v9, %v667_v11  ;;  %v685_v45 = vsub.f32 1.0, %v684_v7  ;;  %v2188_v9 = vld [vmem:[%s2429_s5] ss:$0 sm:$0xff] }
  0xe3   : > { %v676_v53 = vsel %vm673_vm9, %v675_v3, %v671_v8  ;;  %v699_v61 = vmul.f32 %v1442_v57, %v657_v2  ;;  %v2527_v11 = vld [vmem:[#allocation34_spill] sm:$0xff]  ;;  %v2528_v3 = vld [vmem:[#allocation35_spill] sm:$0xff] }
  0xe4   : > { %v698_v60 = vmul.f32 %v676_v53, %v484_v4  ;;  %v686_v1 = vmul.f32 %v1440_v55, %v685_v45  ;;  %v486_v2 = vld [vmem:[#allocation5] sm:$0xff] }
  0xe5   : > { %v2529_v53 = vld [vmem:[#allocation37_spill] sm:$0xff] }
  0xe6   : > { %v2182_v62 = vadd.f32 %v699_v61, %v698_v60  ;;  %v687_v63 = vadd.f32 %v1440_v55, %v686_v1 }
  0xe8   : > { %1443 = vtanh.f32 %v2182_v62  ;;  %v691_v54 = vsel %vm690_vm12, %v1440_v55, %v687_v63 }
  0xe9   : > { %v696_v56 = vsel %vm693_vm13, %v695_v52, %v691_v54 }
  0xee   : > { %v1444_v0 = vpop.eup %1443 }
  0xef   : > { %v2190_v61 = vmul.f32 %v1444_v0, %v696_v56 }
  0xf1   : > { %755 = vmatmul.f32.vlgmr.msra.gmra.mxu0 %v2190_v61  ;;  %775 = vmatmul.f32.vlgmr.msra.gmra.mxu1 %v2190_v61  ;;  %v706_v60 = vmul.f32 %v2188_v9, %v2190_v61 }
  0xf2   : > { %795 = vmatmul.f32.vlgmr.msra.gmra.mxu2 %v2190_v61  ;;  %815 = vmatmul.f32.vlgmr.msra.gmra.mxu3 %v2190_v61 }
  0xf3   : > { %707 = vadd.xlane.f32.xlu0 %v706_v60  ;;  %1095 = vmatpush.msra.mxu0 %v1627_v12  ;;  %v2501_v12 = vld [vmem:[#allocation8_spill] sm:$0xff] }
  0xf4   : > { %1115 = vmatpush.msra.mxu1 %v1632_v13  ;;  %1135 = vmatpush.msra.mxu2 %v1639_v14  ;;  %v2502_v13 = vld [vmem:[#allocation9_spill] sm:$0xff]  ;;  %v2503_v14 = vld [vmem:[#allocation10_spill] sm:$0xff] }
  0xf5   : > { %1155 = vmatpush.msra.mxu3 %v1644_v15  ;;  %1096 = vmatpush.msra.mxu0 %v1651_v16  ;;  %v2504_v15 = vld [vmem:[#allocation11_spill] sm:$0xff]  ;;  %v2505_v16 = vld [vmem:[#allocation12_spill] sm:$0xff] }
  0xf6   : > { %1116 = vmatpush.msra.mxu1 %v1656_v17  ;;  %1136 = vmatpush.msra.mxu2 %v1663_v18  ;;  %v2506_v17 = vld [vmem:[#allocation13_spill] sm:$0xff]  ;;  %v2507_v18 = vld [vmem:[#allocation14_spill] sm:$0xff] }
  0xf7   : > { %1156 = vmatpush.msra.mxu3 %v1668_v19  ;;  %1097 = vmatpush.msra.mxu0 %v1675_v20  ;;  %v2508_v19 = vld [vmem:[#allocation15_spill] sm:$0xff]  ;;  %v2509_v20 = vld [vmem:[#allocation16_spill] sm:$0xff] }
  0xf8   : > { %1117 = vmatpush.msra.mxu1 %v1680_v21  ;;  %1137 = vmatpush.msra.mxu2 %v1687_v22  ;;  %v2510_v21 = vld [vmem:[#allocation17_spill] sm:$0xff]  ;;  %v2511_v22 = vld [vmem:[#allocation18_spill] sm:$0xff] }
  0xf9   : > { %1157 = vmatpush.msra.mxu3 %v1692_v23  ;;  %1098 = vmatpush.msra.mxu0 %v1699_v24  ;;  %v2512_v23 = vld [vmem:[#allocation19_spill] sm:$0xff]  ;;  %v2513_v24 = vld [vmem:[#allocation20_spill] sm:$0xff] }
  0xfa   : > { %1118 = vmatpush.msra.mxu1 %v1704_v25  ;;  %1138 = vmatpush.msra.mxu2 %v1711_v26  ;;  %v2514_v25 = vld [vmem:[#allocation21_spill] sm:$0xff]  ;;  %v2515_v26 = vld [vmem:[#allocation22_spill] sm:$0xff] }
  0xfb   : > { %1158 = vmatpush.msra.mxu3 %v1716_v27  ;;  %1099 = vmatpush.msra.mxu0 %v1728_v29  ;;  %v2516_v27 = vld [vmem:[#allocation23_spill] sm:$0xff]  ;;  %v2517_v29 = vld [vmem:[#allocation24_spill] sm:$0xff] }
  0xfc   : > { %1119 = vmatpush.msra.mxu1 %v1733_v30  ;;  %1139 = vmatpush.msra.mxu2 %v1740_v31  ;;  %v2518_v30 = vld [vmem:[#allocation25_spill] sm:$0xff]  ;;  %v2519_v31 = vld [vmem:[#allocation26_spill] sm:$0xff] }
  0xfd   : > { %1159 = vmatpush.msra.mxu3 %v1745_v32  ;;  %1100 = vmatpush.msra.mxu0 %v1752_v33  ;;  %v2520_v32 = vld [vmem:[#allocation27_spill] sm:$0xff]  ;;  %v2521_v33 = vld [vmem:[#allocation28_spill] sm:$0xff] }
  0xfe   : > { %1120 = vmatpush.msra.mxu1 %v1757_v34  ;;  %1140 = vmatpush.msra.mxu2 %v1764_v35  ;;  %v2522_v34 = vld [vmem:[#allocation29_spill] sm:$0xff]  ;;  %v2523_v35 = vld [vmem:[#allocation30_spill] sm:$0xff] }
  0xff   : > { %1160 = vmatpush.msra.mxu3 %v1769_v36  ;;  %1101 = vmatpush.msra.mxu0 %v1776_v37  ;;  %v2524_v36 = vld [vmem:[#allocation31_spill] sm:$0xff]  ;;  %v2525_v37 = vld [vmem:[#allocation32_spill] sm:$0xff] }
 0x100   : > { %1121 = vmatpush.msra.mxu1 %v1781_v38  ;;  %1141 = vmatpush.msra.mxu2 %v1788_v39  ;;  %v2526_v38 = vld [vmem:[#allocation33_spill] sm:$0xff]  ;;  %v1523_v39 = vmov 0  }
 0x101   : > { %1161 = vmatpush.msra.mxu3 %v1793_v40  ;;  %1102 = vmatpush.msra.mxu0 %v1800_v41  ;;  %v2265_v40 = vld [vmem:[%s2424_s0] sm:$0xff]  ;;  %v2267_v41 = vld [vmem:[#allocation7] ss:$0 sm:$0xff] }
 0x102   : > { %1122 = vmatpush.msra.mxu1 %v1805_v42  ;;  %1142 = vmatpush.msra.mxu2 %v1812_v43  ;;  %v713_v42 = vstv %s1589_s13 }
 0x103   : > { %1162 = vmatpush.msra.mxu3 %v1817_v44  ;;  %1103 = vmatpush.msra.mxu0 %v1829_v46  ;;  %vm714_vm14 = vcmp.lt.s32.totalorder %v713_v42, %v2265_v40  ;;  %v485_v44 = vld [vmem:[#allocation4] sm:$0xff] }
 0x104   : > { %1123 = vmatpush.msra.mxu1 %v1834_v47  ;;  %1143 = vmatpush.msra.mxu2 %v1841_v48 }
 0x105   : > { %1163 = vmatpush.msra.mxu3 %v1846_v49  ;;  %1104 = vmatpush.msra.mxu0 %v1851_v50 }
 0x106   : > { %1124 = vmatpush.msra.mxu1 %v1858_v51  ;;  %1144 = vmatpush.msra.mxu2 %v2501_v12 }
 0x107   : > { %1164 = vmatpush.msra.mxu3 %v2502_v13  ;;  %1105 = vmatpush.msra.mxu0 %v2503_v14 }
 0x108   : > { %1125 = vmatpush.msra.mxu1 %v2504_v15  ;;  %1145 = vmatpush.msra.mxu2 %v2505_v16  ;;  %v2530_v16 = vld [vmem:[#allocation36_spill] sm:$0xff] }
 0x109   : > { %1165 = vmatpush.msra.mxu3 %v2506_v17  ;;  %1106 = vmatpush.msra.mxu0 %v2507_v18 }
 0x10a   : > { %1126 = vmatpush.msra.mxu1 %v2508_v19  ;;  %1146 = vmatpush.msra.mxu2 %v2509_v20 }
 0x10b   : > { %1166 = vmatpush.msra.mxu3 %v2510_v21  ;;  %1107 = vmatpush.msra.mxu0 %v2511_v22 }
 0x10c   : > { %1127 = vmatpush.msra.mxu1 %v2512_v23  ;;  %1147 = vmatpush.msra.mxu2 %v2513_v24 }
 0x10d   : > { %1167 = vmatpush.msra.mxu3 %v2514_v25  ;;  %1108 = vmatpush.msra.mxu0 %v2515_v26 }
 0x10e   : > { %1128 = vmatpush.msra.mxu1 %v2516_v27  ;;  %1148 = vmatpush.msra.mxu2 %v2517_v29 }
 0x10f   : > { %1168 = vmatpush.msra.mxu3 %v2518_v30  ;;  %1109 = vmatpush.msra.mxu0 %v2519_v31 }
 0x110   : > { %1129 = vmatpush.msra.mxu1 %v2520_v32  ;;  %1149 = vmatpush.msra.mxu2 %v2521_v33 }
 0x111   : > { %1169 = vmatpush.msra.mxu3 %v2522_v34  ;;  %1110 = vmatpush.msra.mxu0 %v2523_v35 }
 0x112   : > { %1130 = vmatpush.msra.mxu1 %v2524_v36  ;;  %1150 = vmatpush.msra.mxu2 %v2525_v37 }
 0x113   : > { %1170 = vmatpush.msra.mxu3 %v2526_v38  ;;  %1424 = vset.pattern.permute.xlu0 %v1523_v39 }
 0x114   : > { %1425 = vset.pattern.permute.xlu2 %v1523_v39  ;;  %1426 = vset.pattern.permute.xlu1 %v1523_v39 }
 0x166   : > { %v708_v43 = vpop.xlane.xlu0 %707 }
 0x167   : > { %v712_v46 = vadd.f32 %v2267_v41, %v708_v43 }
 0x169   : > { %v715_v47 = vsel %vm714_vm14, %v712_v46, -1e+30 }
 0x16a   : > { %v2272_v48 = vmax.f32 %v485_v44, %v715_v47 }
 0x16c   : > { %v717_v49 = vsub.f32 %v485_v44, %v2272_v48  ;;  %v720_v50 = vsub.f32 %v712_v46, %v2272_v48 }
 0x16e   : > { %v718_v51 = vmul.f32 1.442695, %v717_v49  ;;  %v721_v58 = vsel %vm714_vm14, %v720_v50, -1e+30  ;;  %v756_v55 = vpop.f32.mrf.mxu0  ;;  %v776_v28 = vpop.f32.mrf.mxu1 }
 0x16f   : > { %v722_v6 = vmul.f32 1.442695, %v721_v58  ;;  %v819_v7 = vadd.f32 %v756_v55, %v2527_v11  ;;  %v820_v4 = vadd.f32 %v776_v28, %v2528_v3  ;;  %v891_v3 = vstv %s890_s22 }
 0x170   : > { %1445 = vpow2.f32 %v718_v51  ;;  %vm892_vm11 = vcmp.lt.s32.totalorder %v891_v3, %v2265_v40 }
 0x171   : > { %1447 = vpow2.f32 %v722_v6  ;;  %v1400_v5 = vmul.f32 -1.442695, %v819_v7  ;;  %v1401_v57 = vmul.f32 -1.442695, %v820_v4 }
 0x173   : > { %1449 = vpow2.f32 %v1400_v5 }
 0x174   : > { %1451 = vpow2.f32 %v1401_v57 }
 0x175   : > { %v816_v8 = vpop.f32.mrf.mxu3  ;;  %v796_v12 = vpop.f32.mrf.mxu2 }
 0x176   : > { %v1446_v45 = vpop.eup %1445  ;;  %v822_v1 = vadd.f32 %v816_v8, %v2529_v53  ;;  %v821_v17 = vadd.f32 %v796_v12, %v2530_v16 }
 0x177   : > { %v1448_v63 = vpop.eup %1447  ;;  %v724_v10 = vmul.f32 %v1446_v45, %v486_v2  ;;  %728 = vperm.xlu0 %1424, %v1446_v45  }
 0x178   : > { %v1402_v59 = vmul.f32 -1.442695, %v822_v1  ;;  %734 = vperm.xlu2 %1425, %v1448_v63  }
 0x179   : > { %v1450_v54 = vpop.eup %1449  ;;  %v2279_v52 = vadd.f32 %v1448_v63, %v724_v10 }
 0x17a   : > { %v1452_v0 = vpop.eup %1451  ;;  %v826_v56 = vadd.f32 1.0, %v1450_v54  ;;  %1453 = vpow2.f32 %v1402_v59  ;;  %v2531_v59 = vld [vmem:[#allocation38_spill] sm:$0xff] }
 0x17b   : > { %v845_v60 = vadd.f32 1.0, %v1452_v0  ;;  %v2532_v0 = vld [vmem:[#allocation39_spill] sm:$0xff] }
 0x17c   : > { %1455 = vrcp.f32 %v826_v56  ;;  %v838_v23 = vand.u32 2147483648, %v826_v56  ;;  %v836_v26 = vand.u32 2147483647, %v826_v56  ;;  %vm832_vm1 = vweird.f32 %v826_v56 }
 0x17d   : > { %1457 = vrcp.f32 %v845_v60  ;;  %v857_v24 = vand.u32 2147483648, %v845_v60  ;;  %v855_v29 = vand.u32 2147483647, %v845_v60  ;;  %vm851_vm2 = vweird.f32 %v845_v60 }
 0x17e   : > { %v839_v32 = vor.u32 1.1754944e-38, %v838_v23  ;;  %vm837_vm5 = vcmp.eq.f32.partialorder %v836_v26, 8.507059e+37  ;;  %v2534_v26 = vld [vmem:[#allocation40_spill] sm:$0xff] }
 0x17f   : > { %v858_v35 = vor.u32 1.1754944e-38, %v857_v24  ;;  %vm856_vm6 = vcmp.eq.f32.partialorder %v855_v29, 8.507059e+37 }
 0x180   : > { %v1454_v13 = vpop.eup %1453 }
 0x181   : > { %v865_v14 = vadd.f32 1.0, %v1454_v13 }
 0x182   : > { %v1456_v15 = vpop.eup %1455 }
 0x183   : > { %v1458_v18 = vpop.eup %1457  ;;  %v828_v19 = vmul.f32 %v1456_v15, %v826_v56  ;;  %1459 = vrcp.f32 %v865_v14  ;;  %vm833_vm15 = vweird.f32 %v1456_v15  ;;  %v877_v51 = vand.u32 2147483648, %v865_v14 }
 0x184   : > { %v847_v20 = vmul.f32 %v1458_v18, %v845_v60  ;;  %1461 = vtanh.f32 %v821_v17  ;;  %vm852_vm0 = vweird.f32 %v1458_v18  ;;  %vm834_vm3 = vmor %vm832_vm1, %vm833_vm15  ;;  %vm871_vm8 = vweird.f32 %v865_v14 }
 0x185   : > { %v829_v21 = vsub.f32 1.0, %v828_v19  ;;  %vm853_vm4 = vmor %vm851_vm2, %vm852_vm0  ;;  %v875_v58 = vand.u32 2147483647, %v865_v14  ;;  %v878_v28 = vor.u32 1.1754944e-38, %v877_v51 }
 0x186   : > { %v848_v22 = vsub.f32 1.0, %v847_v20 }
 0x187   : > { %v830_v25 = vmul.f32 %v1456_v15, %v829_v21  ;;  %vm876_vm10 = vcmp.eq.f32.partialorder %v875_v58, 8.507059e+37 }
 0x188   : > { %v849_v27 = vmul.f32 %v1458_v18, %v848_v22 }
 0x189   : > { %v1460_v30 = vpop.eup %1459  ;;  %v831_v31 = vadd.f32 %v1456_v15, %v830_v25 }
 0x18a   : > { %v850_v33 = vadd.f32 %v1458_v18, %v849_v27  ;;  %v867_v34 = vmul.f32 %v1460_v30, %v865_v14  ;;  %v1462_v37 = vpop.eup %1461  ;;  %vm872_vm7 = vweird.f32 %v1460_v30 }
 0x18b   : > { %v835_v36 = vsel %vm834_vm3, %v1456_v15, %v831_v31  ;;  %vm873_vm9 = vmor %vm871_vm8, %vm872_vm7 }
 0x18c   : > { %v840_v38 = vsel %vm837_vm5, %v839_v32, %v835_v36  ;;  %v854_v39 = vsel %vm853_vm4, %v1458_v18, %v850_v33  ;;  %v868_v42 = vsub.f32 1.0, %v867_v34 }
 0x18d   : > { %v859_v43 = vsel %vm856_vm6, %v858_v35, %v854_v39  ;;  %v882_v44 = vmul.f32 %v1462_v37, %v840_v38 }
 0x18e   : > { %v881_v46 = vmul.f32 %v859_v43, %v2182_v62  ;;  %v869_v47 = vmul.f32 %v1460_v30, %v868_v42 }
 0x190   : > { %v2283_v49 = vadd.f32 %v882_v44, %v881_v46  ;;  %v870_v50 = vadd.f32 %v1460_v30, %v869_v47 }
 0x192   : > { %1463 = vtanh.f32 %v2283_v49  ;;  %v874_v55 = vsel %vm873_vm9, %v1460_v30, %v870_v50 }
 0x193   : > { %v879_v11 = vsel %vm876_vm10, %v878_v28, %v874_v55 }
 0x198   : > { %v1464_v6 = vpop.eup %1463 }
 0x199   : > { %v2286_v7 = vmul.f32 %v1464_v6, %v879_v11 }
 0x19b   : > { %933 = vmatmul.f32.vlgmr.msrb.gmra.mxu0 %v2286_v7  ;;  %953 = vmatmul.f32.vlgmr.msrb.gmra.mxu1 %v2286_v7  ;;  %v886_v62 = vmul.f32 %v2188_v9, %v2286_v7 }
 0x19c   : > { %973 = vmatmul.f32.vlgmr.msrb.gmra.mxu2 %v2286_v7  ;;  %993 = vmatmul.f32.vlgmr.msrb.gmra.mxu3 %v2286_v7 }
 0x19d   : > { %887 = vadd.xlane.f32.xlu1 %v886_v62 }
 0x210   : > { %v888_v4 = vpop.xlane.xlu1 %887 }
 0x211   : > { %v889_v5 = vadd.f32 %v2267_v41, %v888_v4 }
 0x213   : > { %v893_v57 = vsel %vm892_vm11, %v889_v5, -1e+30 }
 0x214   : > { %v2298_v2 = vmax.f32 %v2272_v48, %v893_v57 }
 0x216   : > { %v895_v8 = vsub.f32 %v2272_v48, %v2298_v2  ;;  %v898_v45 = vsub.f32 %v889_v5, %v2298_v2  ;;  %v2533_v48 = vld [vmem:[#allocation41_spill] sm:$0xff] }
 0x218   : > { %v896_v53 = vmul.f32 1.442695, %v895_v8  ;;  %v2303_v1 = vsel %vm892_vm11, %v898_v45, -1e+30  ;;  %v934_v63 = vpop.f32.mrf.mxu0  ;;  %v954_v10 = vpop.f32.mrf.mxu1 }
 0x219   : > { %v997_v54 = vadd.f32 %v934_v63, %v2531_v59  ;;  %v998_v56 = vadd.f32 %v954_v10, %v2532_v0 }
 0x21a   : > { %1465 = vpow2.f32 %v896_v53 }
 0x21b   : > { %v1403_v60 = vmul.f32 -1.442695, %v997_v54  ;;  %v1404_v12 = vmul.f32 -1.442695, %v998_v56  ;;  %v1069_v54 = vstv %s1068_s23 }
 0x21c   : > { %vm1070_vm8 = vcmp.lt.s32.totalorder %v1069_v54, %v2265_v40 }
 0x21d   : > { %1467 = vpow2.f32 %v1403_v60  ;;  %v900_v60 = vmul.f32 1.442695, %v2303_v1 }
 0x21e   : > { %1469 = vpow2.f32 %v1404_v12 }
 0x21f   : > { %v994_v13 = vpop.f32.mrf.mxu3  ;;  %v974_v22 = vpop.f32.mrf.mxu2 }
 0x220   : > { %v2307_v14 = vpop.eup %1465  ;;  %v1000_v15 = vadd.f32 %v994_v13, %v2533_v48  ;;  %v999_v27 = vadd.f32 %v974_v22, %v2534_v26 }
 0x221   : > { %v2312_v16 = vmul.f32 %v2307_v14, %v2279_v52 }
 0x222   : > { %v1405_v17 = vmul.f32 -1.442695, %v1000_v15 }
 0x223   : > { %v1468_v18 = vpop.eup %1467 }
 0x224   : > { %v1470_v19 = vpop.eup %1469  ;;  %v1004_v20 = vadd.f32 1.0, %v1468_v18  ;;  %1471 = vpow2.f32 %v1405_v17 }
 0x225   : > { %v1023_v21 = vadd.f32 1.0, %v1470_v19 }
 0x226   : > { %1473 = vrcp.f32 %v1004_v20  ;;  %v1016_v33 = vand.u32 2147483648, %v1004_v20  ;;  %v1014_v36 = vand.u32 2147483647, %v1004_v20  ;;  %vm1010_vm14 = vweird.f32 %v1004_v20 }
 0x227   : > { %1475 = vrcp.f32 %v1023_v21  ;;  %v1035_v34 = vand.u32 2147483648, %v1023_v21  ;;  %v1033_v38 = vand.u32 2147483647, %v1023_v21  ;;  %vm1029_vm15 = vweird.f32 %v1023_v21 }
 0x228   : > { %v1017_v43 = vor.u32 1.1754944e-38, %v1016_v33  ;;  %vm1015_vm2 = vcmp.eq.f32.partialorder %v1014_v36, 8.507059e+37 }
 0x229   : > { %v1036_v47 = vor.u32 1.1754944e-38, %v1035_v34  ;;  %vm1034_vm3 = vcmp.eq.f32.partialorder %v1033_v38, 8.507059e+37 }
 0x22a   : > { %v1472_v23 = vpop.eup %1471 }
 0x22b   : > { %v1043_v24 = vadd.f32 1.0, %v1472_v23  ;;  %v2536_v23 = vld [vmem:[#allocation43_spill] sm:$0xff] }
 0x22c   : > { %v1474_v25 = vpop.eup %1473 }
 0x22d   : > { %v1476_v29 = vpop.eup %1475  ;;  %v1006_v30 = vmul.f32 %v1474_v25, %v1004_v20  ;;  %1477 = vrcp.f32 %v1043_v24  ;;  %vm1011_vm12 = vweird.f32 %v1474_v25  ;;  %v1055_v57 = vand.u32 2147483648, %v1043_v24 }
 0x22e   : > { %v1025_v31 = vmul.f32 %v1476_v29, %v1023_v21  ;;  %1479 = vtanh.f32 %v999_v27  ;;  %vm1030_vm13 = vweird.f32 %v1476_v29  ;;  %vm1012_vm0 = vmor %vm1010_vm14, %vm1011_vm12  ;;  %vm1049_vm5 = vweird.f32 %v1043_v24  ;;  %v2535_v21 = vld [vmem:[#allocation42_spill] sm:$0xff] }
 0x22f   : > { %v1007_v52 = vsub.f32 1.0, %v1006_v30  ;;  %vm1031_vm1 = vmor %vm1029_vm15, %vm1030_vm13  ;;  %v1053_v8 = vand.u32 2147483647, %v1043_v24  ;;  %v1056_v53 = vor.u32 1.1754944e-38, %v1055_v57  ;;  %v2537_v30 = vld [vmem:[#allocation45_spill] sm:$0xff] }
 0x230   : > { %v1026_v32 = vsub.f32 1.0, %v1025_v31 }
 0x231   : > { %v1008_v35 = vmul.f32 %v1474_v25, %v1007_v52  ;;  %vm1054_vm7 = vcmp.eq.f32.partialorder %v1053_v8, 8.507059e+37 }
 0x232   : > { %v1027_v37 = vmul.f32 %v1476_v29, %v1026_v32 }
 0x233   : > { %v1478_v39 = vpop.eup %1477  ;;  %v1009_v42 = vadd.f32 %v1474_v25, %v1008_v35 }
 0x234   : > { %v1028_v44 = vadd.f32 %v1476_v29, %v1027_v37  ;;  %v1045_v46 = vmul.f32 %v1478_v39, %v1043_v24  ;;  %v1480_v51 = vpop.eup %1479  ;;  %vm1050_vm4 = vweird.f32 %v1478_v39 }
 0x235   : > { %v1013_v50 = vsel %vm1012_vm0, %v1474_v25, %v1009_v42  ;;  %vm1051_vm6 = vmor %vm1049_vm5, %vm1050_vm4 }
 0x236   : > { %v1018_v58 = vsel %vm1015_vm2, %v1017_v43, %v1013_v50  ;;  %v1032_v55 = vsel %vm1031_vm1, %v1476_v29, %v1028_v44  ;;  %v1046_v28 = vsub.f32 1.0, %v1045_v46  ;;  %v2538_v44 = vld [vmem:[#allocation44_spill] sm:$0xff] }
 0x237   : > { %v1037_v6 = vsel %vm1034_vm3, %v1036_v47, %v1032_v55  ;;  %v1060_v11 = vmul.f32 %v1480_v51, %v1018_v58 }
 0x238   : > { %v1059_v62 = vmul.f32 %v1037_v6, %v2283_v49  ;;  %v1047_v3 = vmul.f32 %v1478_v39, %v1046_v28 }
 0x23a   : > { %v2316_v4 = vadd.f32 %v1060_v11, %v1059_v62  ;;  %v1048_v5 = vadd.f32 %v1478_v39, %v1047_v3 }
 0x23c   : > { %1481 = vtanh.f32 %v2316_v4  ;;  %v1052_v45 = vsel %vm1051_vm6, %v1478_v39, %v1048_v5  ;;  %vm1275_vm6 = vcmask 7168  }
 0x23d   : > { %v1057_v10 = vsel %vm1054_vm7, %v1056_v53, %v1052_v45  ;;  %1483 = vpow2.f32 %v900_v60 }
 0x242   : > { %v1482_v63 = vpop.eup %1481 }
 0x243   : > { %v2319_v59 = vmul.f32 %v1482_v63, %v1057_v10  ;;  %v2340_v26 = vpop.eup %1483 }
 0x245   : > { %1111 = vmatmul.f32.vlgmr.msra.gmra.mxu0 %v2319_v59  ;;  %1131 = vmatmul.f32.vlgmr.msra.gmra.mxu1 %v2319_v59  ;;  %v1064_v49 = vmul.f32 %v2188_v9, %v2319_v59 }
 0x246   : > { %1151 = vmatmul.f32.vlgmr.msra.gmra.mxu2 %v2319_v59  ;;  %1171 = vmatmul.f32.vlgmr.msra.gmra.mxu3 %v2319_v59 }
 0x247   : > { %1065 = vadd.xlane.f32.xlu1 %v1064_v49 }
 0x260   : > { %906 = vperm.xlu1 %1426, %v2307_v14  }
 0x2ba   : > { %v1066_v0 = vpop.xlane.xlu1 %1065 }
 0x2bb   : > { %v1067_v56 = vadd.f32 %v2267_v41, %v1066_v0 }
 0x2bd   : > { %v1071_v12 = vsel %vm1070_vm8, %v1067_v56, -1e+30 }
 0x2be   : > { %v2333_v13 = vmax.f32 %v2298_v2, %v1071_v12 }
 0x2c0   : > { %v1073_v48 = vsub.f32 %v2298_v2, %v2333_v13  ;;  %v1076_v15 = vsub.f32 %v1067_v56, %v2333_v13  ;;  %v903_v2 = vadd.f32 %v2340_v26, %v2312_v16 }
 0x2c2   : > { %v1074_v14 = vmul.f32 1.442695, %v1073_v48  ;;  %v1077_v17 = vsel %vm1070_vm8, %v1076_v15, -1e+30  ;;  %v1112_v18 = vpop.f32.mrf.mxu0  ;;  %v1132_v19 = vpop.f32.mrf.mxu1 }
 0x2c3   : > { %v1078_v20 = vmul.f32 1.442695, %v1077_v17  ;;  %v1175_v22 = vadd.f32 %v1112_v18, %v2535_v21  ;;  %v1176_v24 = vadd.f32 %v1132_v19, %v2536_v23 }
 0x2c4   : > { %1485 = vpow2.f32 %v1074_v14 }
 0x2c5   : > { %1487 = vpow2.f32 %v1078_v20  ;;  %v1406_v1 = vmul.f32 -1.442695, %v1175_v22  ;;  %v1407_v25 = vmul.f32 -1.442695, %v1176_v24 }
 0x2c7   : > { %1489 = vpow2.f32 %v1406_v1 }
 0x2c8   : > { %1491 = vpow2.f32 %v1407_v25 }
 0x2c9   : > { %v1172_v27 = vpop.f32.mrf.mxu3  ;;  %v1152_v16 = vpop.f32.mrf.mxu2 }
 0x2ca   : > { %v2344_v29 = vpop.eup %1485  ;;  %v1178_v31 = vadd.f32 %v1172_v27, %v2537_v30  ;;  %v1177_v46 = vadd.f32 %v1152_v16, %v2538_v44 }
 0x2cb   : > { %v1488_v52 = vpop.eup %1487  ;;  %v1080_v32 = vmul.f32 %v2344_v29, %v903_v2  ;;  %v1247_v2 = vstv %s1246_s24 }
 0x2cc   : > { %v1408_v33 = vmul.f32 -1.442695, %v1178_v31  ;;  %1090 = vperm.xlu1 %1426, %v1488_v52   ;;  %vm1248_vm5 = vcmp.lt.s32.totalorder %v1247_v2, %v2265_v40 }
 0x2cd   : > { %v1490_v34 = vpop.eup %1489  ;;  %v2348_v35 = vadd.f32 %v1488_v52, %v1080_v32 }
 0x2ce   : > { %v1492_v36 = vpop.eup %1491  ;;  %v1182_v37 = vadd.f32 1.0, %v1490_v34  ;;  %1493 = vpow2.f32 %v1408_v33 }
 0x2cf   : > { %v1201_v38 = vadd.f32 1.0, %v1492_v36 }
 0x2d0   : > { %1495 = vrcp.f32 %v1182_v37  ;;  %v1194_v28 = vand.u32 2147483648, %v1182_v37  ;;  %v1192_v62 = vand.u32 2147483647, %v1182_v37  ;;  %vm1188_vm11 = vweird.f32 %v1182_v37 }
 0x2d1   : > { %1497 = vrcp.f32 %v1201_v38  ;;  %v1213_v6 = vand.u32 2147483648, %v1201_v38  ;;  %v1211_v5 = vand.u32 2147483647, %v1201_v38  ;;  %vm1207_vm12 = vweird.f32 %v1201_v38 }
 0x2d2   : > { %v1195_v45 = vor.u32 1.1754944e-38, %v1194_v28  ;;  %vm1193_vm15 = vcmp.eq.f32.partialorder %v1192_v62, 8.507059e+37 }
 0x2d3   : > { %v1214_v10 = vor.u32 1.1754944e-38, %v1213_v6  ;;  %vm1212_vm0 = vcmp.eq.f32.partialorder %v1211_v5, 8.507059e+37 }
 0x2d4   : > { %v1494_v39 = vpop.eup %1493 }
 0x2d5   : > { %v1221_v42 = vadd.f32 1.0, %v1494_v39  ;;  %v907_v39 = vpop.permute.xlu1 %906 }
 0x2d6   : > { %v1496_v43 = vpop.eup %1495 }
 0x2d7   : > { %v1498_v47 = vpop.eup %1497  ;;  %v1184_v50 = vmul.f32 %v1496_v43, %v1182_v37  ;;  %1499 = vrcp.f32 %v1221_v42  ;;  %vm1189_vm9 = vweird.f32 %v1496_v43  ;;  %v1233_v19 = vand.u32 2147483648, %v1221_v42 }
 0x2d8   : > { %v1203_v51 = vmul.f32 %v1498_v47, %v1201_v38  ;;  %1501 = vtanh.f32 %v1177_v46  ;;  %vm1208_vm10 = vweird.f32 %v1498_v47  ;;  %vm1190_vm13 = vmor %vm1188_vm11, %vm1189_vm9  ;;  %vm1227_vm2 = vweird.f32 %v1221_v42  ;;  %v487_v38 = vld [vmem:[#allocation6] sm:$0xff] }
 0x2d9   : > { %v1185_v58 = vsub.f32 1.0, %v1184_v50  ;;  %vm1209_vm14 = vmor %vm1207_vm12, %vm1208_vm10  ;;  %v1231_v20 = vand.u32 2147483647, %v1221_v42  ;;  %v1234_v22 = vor.u32 1.1754944e-38, %v1233_v19 }
 0x2da   : > { %v1204_v55 = vsub.f32 1.0, %v1203_v51 }
 0x2db   : > { %v1186_v11 = vmul.f32 %v1496_v43, %v1185_v58  ;;  %vm1232_vm4 = vcmp.eq.f32.partialorder %v1231_v20, 8.507059e+37 }
 0x2dc   : > { %v1205_v3 = vmul.f32 %v1498_v47, %v1204_v55 }
 0x2dd   : > { %v1500_v57 = vpop.eup %1499  ;;  %v1187_v8 = vadd.f32 %v1496_v43, %v1186_v11 }
 0x2de   : > { %v1206_v53 = vadd.f32 %v1498_v47, %v1205_v3  ;;  %v1223_v63 = vmul.f32 %v1500_v57, %v1221_v42  ;;  %v1502_v54 = vpop.eup %1501  ;;  %vm1228_vm1 = vweird.f32 %v1500_v57 }
 0x2df   : > { %v1191_v49 = vsel %vm1190_vm13, %v1496_v43, %v1187_v8  ;;  %vm1229_vm3 = vmor %vm1227_vm2, %vm1228_vm1 }
 0x2e0   : > { %v1196_v0 = vsel %vm1193_vm15, %v1195_v45, %v1191_v49  ;;  %v1210_v56 = vsel %vm1209_vm14, %v1498_v47, %v1206_v53  ;;  %v1224_v60 = vsub.f32 1.0, %v1223_v63 }
 0x2e1   : > { %v1215_v12 = vsel %vm1212_vm0, %v1214_v10, %v1210_v56  ;;  %v1238_v48 = vmul.f32 %v1502_v54, %v1196_v0 }
 0x2e2   : > { %v1237_v15 = vmul.f32 %v1215_v12, %v2316_v4  ;;  %v1225_v14 = vmul.f32 %v1500_v57, %v1224_v60  ;;  %v735_v4 = vpop.permute.xlu2 %734 }
 0x2e3   : > { %v737_v42 = vmul.f32 %v735_v4, %v2190_v61 }
 0x2e4   : > { %v1239_v17 = vadd.f32 %v1238_v48, %v1237_v15  ;;  %v1226_v18 = vadd.f32 %v1500_v57, %v1225_v14 }
 0x2e6   : > { %1503 = vtanh.f32 %v1239_v17  ;;  %1274 = vst [vmem:[#allocation3] sm:$0xff] %v1239_v17  ;;  %v1230_v21 = vsel %vm1229_vm3, %v1500_v57, %v1226_v18 }
 0x2e7   : > { %v1235_v24 = vsel %vm1232_vm4, %v1234_v22, %v1230_v21 }
 0x2ec   : > { %v1504_v23 = vpop.eup %1503 }
 0x2ed   : > { %v1241_v1 = vmul.f32 %v1504_v23, %v1235_v24 }
 0x2ef   : > { %v1242_v25 = vmul.f32 %v2188_v9, %v1241_v1  ;;  %1273 = vst [vmem:[#allocation2] sm:$0xff] %v1241_v1 }
 0x2f1   : > { %1243 = vadd.xlane.f32.xlu2 %v1242_v25 }
 0x309   : > { %912 = vperm.xlu2 %1425, %v2340_v26  }
 0x311   : > { %1084 = vperm.xlu2 %1425, %v2344_v29  }
 0x33e   : > { %v1091_v51 = vpop.permute.xlu1 %1090 }
 0x33f   : > { %v1093_v58 = vmul.f32 %v1091_v51, %v2319_v59 }
 0x364   : > { %v1244_v27 = vpop.xlane.xlu2 %1243 }
 0x365   : > { %v1245_v30 = vadd.f32 %v2267_v41, %v1244_v27 }
 0x367   : > { %v1249_v31 = vsel %vm1248_vm5, %v1245_v30, -1e+30 }
 0x368   : > { %v1250_v52 = vmax.f32 %v2333_v13, %v1249_v31 }
 0x36a   : > { %v1251_v9 = vsub.f32 %v2333_v13, %v1250_v52  ;;  %v1254_v32 = vsub.f32 %v1245_v30, %v1250_v52  ;;  %1276 = vst.msk [vmem:[#allocation4] sm:$0xff] %vm1275_vm6, %v1250_v52  ;;  %v729_v13 = vpop.permute.xlu0 %728 }
 0x36b   : > { %v731_v16 = vmul.f32 %v729_v13, %v487_v38 }
 0x36c   : > { %v1252_v26 = vmul.f32 1.442695, %v1251_v9  ;;  %v1255_v33 = vsel %vm1248_vm5, %v1254_v32, -1e+30  ;;  %v913_v37 = vpop.permute.xlu2 %912 }
 0x36d   : > { %v1256_v29 = vmul.f32 1.442695, %v1255_v33  ;;  %v738_v43 = vadd.f32 %v737_v42, %v731_v16  ;;  %v915_v44 = vmul.f32 %v913_v37, %v2286_v7 }
 0x36e   : > { %1505 = vpow2.f32 %v1252_v26 }
 0x36f   : > { %1507 = vpow2.f32 %v1256_v29  ;;  %v909_v47 = vmul.f32 %v907_v39, %v738_v43 }
 0x371   : > { %v916_v50 = vadd.f32 %v915_v44, %v909_v47 }
 0x374   : > { %v1506_v34 = vpop.eup %1505  ;;  %v1085_v46 = vpop.permute.xlu2 %1084 }
 0x375   : > { %v1508_v36 = vpop.eup %1507  ;;  %v1258_v40 = vmul.f32 %v1506_v34, %v2348_v35  ;;  %1262 = vperm.xlu0 %1424, %v1506_v34   ;;  %v1087_v35 = vmul.f32 %v1085_v46, %v916_v50 }
 0x376   : > { %1268 = vperm.xlu2 %1425, %v1508_v36  }
 0x377   : > { %v1259_v41 = vadd.f32 %v1508_v36, %v1258_v40  ;;  %v1094_v28 = vadd.f32 %v1093_v58, %v1087_v35 }
 0x379   : > { %1277 = vst.msk [vmem:[#allocation5] sm:$0xff] %vm1275_vm6, %v1259_v41 }
 0x3d0   : > { %v1269_v55 = vpop.permute.xlu2 %1268 }
 0x3d1   : > { %v1271_v11 = vmul.f32 %v1269_v55, %v1241_v1 }
 0x3e7   : > { %v1263_v6 = vpop.permute.xlu0 %1262 }
 0x3e8   : > { %v1265_v62 = vmul.f32 %v1263_v6, %v1094_v28  ;;  %1282 = sbr.rel (%p1409_p5) target bundleno = 1270 (0x4f6), region = 64 }
 0x3ea   : > { %v1272_v3 = vadd.f32 %v1271_v11, %v1265_v62 }
 0x3ec   : > { %1278 = vst [vmem:[#allocation6] sm:$0xff] %v1272_v3 }
 0x3ed   : > { %v1318_v61 = vld [vmem:[%s2431_s7 + $0x78] sm:$0xff]  ;;  %v1317_v7 = vld [vmem:[%s2431_s7 + $0x70] sm:$0xff]  ;;  %v1524_v5 = vmov 0   ;;  %v1316_v59 = vld [vmem:[%s2431_s7 + $0x68] sm:$0xff]  ;;  %vm1343_vm11 = vcmask 31744  }
 0x3ee   : > { %1509 = vset.pattern.permute.xlu0 %v1524_v5  ;;  %1323 = vmatpush.msra.mxu0 %v1318_v61  ;;  %v1315_v57 = vld [vmem:[%s2431_s7 + $0x60] sm:$0xff]  ;;  %v1314_v8 = vld [vmem:[%s2431_s7 + $0x58] sm:$0xff]  ;;  %v1313_v45 = vld [vmem:[%s2431_s7 + $0x50] sm:$0xff] }
 0x3ef   : > { %1285 = vperm.xlu0 %1509, %v1259_v41   ;;  %v1312_v53 = vld [vmem:[%s2431_s7 + $0x48] sm:$0xff]  ;;  %v1311_v63 = vld [vmem:[%s2431_s7 + $0x40] sm:$0xff]  ;;  %v1310_v10 = vld [vmem:[%s2431_s7 + $0x38] sm:$0xff] }
 0x3f0   : > { %1324 = vmatpush.msra.mxu0 %v1317_v7  ;;  %v1309_v49 = vld [vmem:[%s2431_s7 + $0x30] sm:$0xff]  ;;  %v1308_v54 = vld [vmem:[%s2431_s7 + $0x28] sm:$0xff]  ;;  %v1307_v0 = vld [vmem:[%s2431_s7 + $0x20] sm:$0xff] }
 0x3f1   : > { %v1306_v56 = vld [vmem:[%s2431_s7 + $0x18] sm:$0xff]  ;;  %v1305_v60 = vld [vmem:[%s2431_s7 + $0x10] sm:$0xff]  ;;  %v1304_v12 = vld [vmem:[%s2431_s7 + $0x8] sm:$0xff] }
 0x3f2   : > { %1325 = vmatpush.msra.mxu0 %v1316_v59  ;;  %v1303_v48 = vld [vmem:[%s2431_s7] sm:$0xff] }
 0x3f3   : > { %v1510_v4 = vld [vmem:[%s2432_s8] ss:$0 sm:$0xff] }
 0x3f4   : > { %1326 = vmatpush.msra.mxu0 %v1315_v57 }
 0x3f6   : > { %1327 = vmatpush.msra.mxu0 %v1314_v8 }
 0x3f8   : > { %1328 = vmatpush.msra.mxu0 %v1313_v45 }
 0x3fa   : > { %1329 = vmatpush.msra.mxu0 %v1312_v53 }
 0x3fc   : > { %1330 = vmatpush.msra.mxu0 %v1311_v63 }
 0x3fe   : > { %1331 = vmatpush.msra.mxu0 %v1310_v10 }
 0x400   : > { %1332 = vmatpush.msra.mxu0 %v1309_v49 }
 0x402   : > { %1333 = vmatpush.msra.mxu0 %v1308_v54 }
 0x404   : > { %1334 = vmatpush.msra.mxu0 %v1307_v0 }
 0x406   : > { %1335 = vmatpush.msra.mxu0 %v1306_v56 }
 0x408   : > { %1336 = vmatpush.msra.mxu0 %v1305_v60 }
 0x40a   : > { %1337 = vmatpush.msra.mxu0 %v1304_v12 }
 0x40c   : > { %1338 = vmatpush.msra.mxu0 %v1303_v48 }
 0x461   : > { %v1286_v15 = vpop.permute.xlu0 %1285 }
 0x462   : > { %1511 = vrcp.f32 %v1286_v15  ;;  %v1299_v19 = vand.u32 2147483648, %v1286_v15  ;;  %v1297_v21 = vand.u32 2147483647, %v1286_v15  ;;  %vm1293_vm8 = vweird.f32 %v1286_v15 }
 0x464   : > { %v1300_v23 = vor.u32 1.1754944e-38, %v1299_v19  ;;  %vm1298_vm10 = vcmp.eq.f32.partialorder %v1297_v21, 8.507059e+37 }
 0x468   : > { %v1512_v14 = vpop.eup %1511 }
 0x469   : > { %v1289_v17 = vmul.f32 %v1512_v14, %v1286_v15  ;;  %vm1294_vm7 = vweird.f32 %v1512_v14 }
 0x46a   : > { %vm1295_vm9 = vmor %vm1293_vm8, %vm1294_vm7 }
 0x46b   : > { %v1290_v18 = vsub.f32 1.0, %v1289_v17 }
 0x46d   : > { %v1291_v20 = vmul.f32 %v1512_v14, %v1290_v18 }
 0x46f   : > { %v1292_v22 = vadd.f32 %v1512_v14, %v1291_v20 }
 0x471   : > { %v1296_v24 = vsel %vm1295_vm9, %v1512_v14, %v1292_v22 }
 0x472   : > { %v1301_v1 = vsel %vm1298_vm10, %v1300_v23, %v1296_v24 }
 0x473   : > { %v1302_v25 = vmul.f32 %v1301_v1, %v1272_v3 }
 0x475   : > { %1339 = vmatmul.f32.vlgmr.msra.gmra.mxu0 %v1302_v25 }
 0x4f2   : > { %v1340_v2 = vpop.f32.mrf.mxu0 }
 0x4f3   : > { %v1341_v27 = vadd.f32 %v1510_v4, %v1340_v2 }
 0x4f5   : > { %1344 = vst.msk [vmem:[%s2433_s9] sm:$0xff] %vm1343_vm11, %v1341_v27 }
 0x4f6 PF: > { %s21_s11 = sadd.s32 1, %s1519_s11  }
 0x4f7   : > { %p18_p6 = scmp.ge.s32.totalorder %s21_s11, 4  }
 0x4f9   :  { %20 = sbr.rel (!%p18_p6) target bundleno = 3 (0x3), region = 90 }

</bundles_post_ra>
